<compile_context>
chip_gen: v7x
topology: tpu7x:2x2x1
jax: 0.10.0
libtpu: 0.0.40
codegen_flags: <defaults>
</compile_context>

<pallas_src>
import math
import functools

import jax
import jax.numpy as jnp
from jax import lax
from jax.experimental import pallas as pl
from jax.experimental.pallas import tpu as pltpu


# ---------------------------------------------------------------------------
# Fused kernel body: QKV projection + attention for one (batch block, head group)
# ---------------------------------------------------------------------------
def _attention_body(x_ref, w_ref, b_ref, ctx_ref, probs_ref, *,
                    heads_per_group, head_size):
    TB, S, H_in = x_ref.shape
    D = head_size
    Hg = heads_per_group * D
    scale = 1.0 / math.sqrt(D)

    # One MXU stream for all three projections of this head group:
    #   (TB*S, H) bf16 @ (H, 3*Hg) bf16 -> f32 accumulate, + f32 bias row.
    x = x_ref[...].reshape(TB * S, H_in).astype(jnp.bfloat16)
    qkv = jnp.dot(x, w_ref[...], preferred_element_type=jnp.float32) + b_ref[...]

    pair = 2 if heads_per_group % 2 == 0 else 1

    for tb in range(TB):
        r0 = tb * S
        q = qkv[r0:r0 + S, 0:Hg] * scale          # fold 1/sqrt(D) into q once
        k = qkv[r0:r0 + S, Hg:2 * Hg]
        v = qkv[r0:r0 + S, 2 * Hg:3 * Hg]

        for p0 in range(0, heads_per_group, pair):
            ctx_cols = []
            for h in range(p0, p0 + pair):
                lo = h * D
                qh = q[:, lo:lo + D].astype(jnp.bfloat16)
                kh = k[:, lo:lo + D].astype(jnp.bfloat16)
                vh = v[:, lo:lo + D].astype(jnp.bfloat16)

                # q @ k^T without materializing a transpose of K (bf16 MXU, f32 acc).
                scores = lax.dot_general(qh, kh, (((1,), (1,)), ((), ())),
                                         preferred_element_type=jnp.float32)  # (S, S)

                m = jnp.max(scores, axis=-1, keepdims=True)
                # exp through the EUP in bf16 (native on v6e/v7x, upcast on v5e).
                e = jnp.exp((scores - m).astype(jnp.bfloat16)).astype(jnp.float32)
                denom = jnp.sum(e, axis=-1, keepdims=True)

                if probs_ref is not None:
                    probs = e / denom             # exact: returned rows sum to 1
                    probs_ref[tb, h] = probs.astype(probs_ref.dtype)
                else:
                    probs = e * pl.reciprocal(denom, approx=True)

                ctx_cols.append(jnp.dot(probs.astype(jnp.bfloat16), vh,
                                        preferred_element_type=jnp.float32))   # (S, D)

            # Store the head PAIR directly (2*D lanes -> one unmasked vst when D=64);
            # bounds per-pair live ranges instead of one giant end-of-kernel concat.
            ctx_tile = ctx_cols[0] if pair == 1 else jnp.concatenate(ctx_cols, axis=-1)
            ctx_ref[tb, :, p0 * D:(p0 + pair) * D] = ctx_tile.astype(ctx_ref.dtype)


def _fused_kernel(x_ref, w_ref, b_ref, ctx_ref, *, heads_per_group, head_size):
    _attention_body(x_ref, w_ref, b_ref, ctx_ref, None,
                    heads_per_group=heads_per_group, head_size=head_size)


def _fused_kernel_with_probs(x_ref, w_ref, b_ref, ctx_ref, probs_ref, *,
                             heads_per_group, head_size):
    _attention_body(x_ref, w_ref, b_ref, ctx_ref, probs_ref,
                    heads_per_group=heads_per_group, head_size=head_size)


# ---------------------------------------------------------------------------
# Module wrapper (matches ViTSelfAttention.forward semantics, eval mode)
# ---------------------------------------------------------------------------
def vit_self_attention(hidden_states, params, *, num_heads, output_attentions=False):
    B, S, H = hidden_states.shape
    assert H % num_heads == 0, "hidden_size must be divisible by num_attention_heads"
    D = H // num_heads

    # Head grouping for the second grid axis: smallest #heads whose ctx slab is a
    # 128-lane multiple (e.g. D=64 -> 2 heads/group); fall back to one group.
    req = 128 // math.gcd(D, 128)
    hpg = req if (req <= num_heads and num_heads % req == 0) else num_heads
    G = num_heads // hpg
    Hg = hpg * D

    # Batch folding: fill MXU M-dim / vreg sublanes when S is tiny.
    TB = 1
    for cand in range(1, B + 1):
        if B % cand == 0 and cand * S <= 256:
            TB = cand
    NB = B // TB

    # Pack the three linears group-major; weight in bf16 (halves DMA + VMEM),
    # bias kept f32 (tiny; added to the f32 accumulator).
    def _gm(w):  # (H, H) -> (H, G, Hg)
        return w.reshape(H, G, Hg)

    w_qkv = jnp.concatenate([_gm(params["wq"]), _gm(params["wk"]), _gm(params["wv"])],
                            axis=-1).reshape(H, G * 3 * Hg).astype(jnp.bfloat16)
    b_qkv = jnp.concatenate([params["bq"].reshape(G, Hg),
                             params["bk"].reshape(G, Hg),
                             params["bv"].reshape(G, Hg)],
                            axis=-1).reshape(1, G * 3 * Hg).astype(jnp.float32)

    x_spec = pl.BlockSpec((TB, S, H), lambda b, g: (b, 0, 0))
    ctx_spec = pl.BlockSpec((TB, S, Hg), lambda b, g: (b, 0, g))
    ctx_shape = jax.ShapeDtypeStruct((B, S, H), hidden_states.dtype)

    kernel_kwargs = dict(heads_per_group=hpg, head_size=D)
    if output_attentions:
        kernel = functools.partial(_fused_kernel_with_probs, **kernel_kwargs)
        out_shape = (ctx_shape,
                     jax.ShapeDtypeStruct((B, num_heads, S, S), hidden_states.dtype))
        out_specs = (ctx_spec,
                     pl.BlockSpec((TB, hpg, S, S), lambda b, g: (b, g, 0, 0)))
    else:
        kernel = functools.partial(_fused_kernel, **kernel_kwargs)
        out_shape = ctx_shape
        out_specs = ctx_spec

    # Explicit VMEM budget derived from the actual per-step working set.
    ws = (2 * TB * S * H * 4                # x, double-buffered, f32
          + 2 * H * 3 * Hg * 2              # bf16 weight block (<= 2 buffers)
          + 2 * 3 * Hg * 4                  # bias
          + 2 * TB * S * Hg * 4             # ctx, double-buffered
          + 2 * TB * S * 3 * Hg * 4)        # qkv + per-head temporaries headroom
    if output_attentions:
        ws += 2 * TB * hpg * S * S * 4
    vmem_limit = int(min(64 * 1024 * 1024, max(16 * 1024 * 1024, 2 * ws)))

    def _build(single_buffer_wb):
        if single_buffer_wb:
            w_spec = pl.BlockSpec((H, 3 * Hg), lambda b, g: (0, g),
                                  pipeline_mode=pl.Buffered(buffer_count=1))
            b_spec = pl.BlockSpec((1, 3 * Hg), lambda b, g: (0, g),
                                  pipeline_mode=pl.Buffered(buffer_count=1))
        else:
            w_spec = pl.BlockSpec((H, 3 * Hg), lambda b, g: (0, g))
            b_spec = pl.BlockSpec((1, 3 * Hg), lambda b, g: (0, g))
        return pl.pallas_call(
            kernel,
            out_shape=out_shape,
            grid_spec=pltpu.PrefetchScalarGridSpec(
                num_scalar_prefetch=0,
                grid=(NB, G),
                in_specs=[x_spec, w_spec, b_spec],
                out_specs=out_specs,
            ),
            compiler_params=pltpu.CompilerParams(
                dimension_semantics=("parallel", "parallel"),
                vmem_limit_bytes=vmem_limit),
        )

    # Weight/bias blocks are grid-invariant when G == 1 -> single-buffer them.
    # Fall back to default double-buffering if this JAX build rejects Buffered(1).
    if G == 1:
        try:
            outs = _build(True)(hidden_states, w_qkv, b_qkv)
        except Exception:  # pragma: no cover - Buffered(1) unsupported
            outs = _build(False)(hidden_states, w_qkv, b_qkv)
    else:
        outs = _build(False)(hidden_states, w_qkv, b_qkv)

    if output_attentions:
        context_layer, attention_probs = outs
        return context_layer, attention_probs
    return (outs,)


# ---------------------------------------------------------------------------
# Main
# ---------------------------------------------------------------------------
if __name__ == "__main__":
    # small config: hidden_size=32, num_attention_heads=4, seq=8, batch=2
    B, S, HIDDEN, NUM_HEADS = 2, 8, 32, 4
    D = HIDDEN // NUM_HEADS

    key = jax.random.PRNGKey(0)
    kx, kq, kk, kv, kbq, kbk, kbv = jax.random.split(key, 7)

    x = jax.random.normal(kx, (B, S, HIDDEN), dtype=jnp.float32)

    # deterministic parameter init (Linear-like scale), stored as (in, out)
    init = 1.0 / math.sqrt(HIDDEN)
    params = {
        "wq": jax.random.uniform(kq, (HIDDEN, HIDDEN), jnp.float32, -init, init),
        "wk": jax.random.uniform(kk, (HIDDEN, HIDDEN), jnp.float32, -init, init),
        "wv": jax.random.uniform(kv, (HIDDEN, HIDDEN), jnp.float32, -init, init),
        "bq": jax.random.uniform(kbq, (HIDDEN,), jnp.float32, -init, init),
        "bk": jax.random.uniform(kbk, (HIDDEN,), jnp.float32, -init, init),
        "bv": jax.random.uniform(kbv, (HIDDEN,), jnp.float32, -init, init),
    }

    # Path 1: default (context only)
    (context_layer,) = vit_self_attention(x, params, num_heads=NUM_HEADS)
    jax.block_until_ready(context_layer)

    # Path 2: output_attentions=True
    context_layer2, attn_probs = vit_self_attention(
        x, params, num_heads=NUM_HEADS, output_attentions=True)
    jax.block_until_ready(attn_probs)

    # quick reference check in plain JAX (f32)
    def ref(x, p):
        q = x @ p["wq"] + p["bq"]
        k = x @ p["wk"] + p["bk"]
        v = x @ p["wv"] + p["bv"]

        def th(t):
            return t.reshape(B, S, NUM_HEADS, D).transpose(0, 2, 1, 3)

        qh, kh, vh = th(q), th(k), th(v)
        s = jnp.einsum("bhqd,bhkd->bhqk", qh, kh) / math.sqrt(D)
        p_ = jax.nn.softmax(s, axis=-1)
        c = jnp.einsum("bhqk,bhkd->bhqd", p_, vh)
        return c.transpose(0, 2, 1, 3).reshape(B, S, HIDDEN), p_

    ref_ctx, ref_probs = ref(x, params)
    # bf16 MXU operands + bf16 exp -> relaxed parity vs the pure-f32 reference
    assert context_layer.shape == (B, S, HIDDEN)
    assert attn_probs.shape == (B, NUM_HEADS, S, S)
    assert jnp.allclose(context_layer, ref_ctx, atol=5e-2, rtol=5e-2)
    assert jnp.allclose(context_layer2, ref_ctx, atol=5e-2, rtol=5e-2)
    assert jnp.allclose(attn_probs, ref_probs, atol=5e-2, rtol=5e-2)
    print("KERNEL_OK")
</pallas_src>

<mosaic_0001>
module attributes {stable_mosaic.version = 11 : i64} {
  func.func @_fused_kernel(%arg0: i32, %arg1: i32, %arg2: memref<2x8x32xf32, #tpu.memory_space<vmem>>, %arg3: memref<32x96xbf16, #tpu.memory_space<vmem>>, %arg4: memref<1x96xf32, #tpu.memory_space<vmem>>, %arg5: memref<2x8x32xf32, #tpu.memory_space<vmem>>) attributes {dimension_semantics = [#tpu.dimension_semantics<parallel>, #tpu.dimension_semantics<parallel>], iteration_bounds = array<i64: 1, 1>, scalar_prefetch = 0 : i64, scratch_operands = 0 : i64, tpu.core_type = #tpu.core_type<tc>, window_params = [{transform_indices = @transform_0, window_bounds = array<i64: 2, 8, 32>}, {pipeline_mode = #tpu.pipeline_mode<synchronous>, transform_indices = @transform_1, window_bounds = array<i64: 32, 96>}, {pipeline_mode = #tpu.pipeline_mode<synchronous>, transform_indices = @transform_2, window_bounds = array<i64: 1, 96>}, {transform_indices = @transform_3, window_bounds = array<i64: 2, 8, 32>}]} {
    %c0 = arith.constant 0 : index
    %c0_0 = arith.constant 0 : index
    %c0_1 = arith.constant 0 : index
    %0 = vector.load %arg2[%c0, %c0_0, %c0_1] : memref<2x8x32xf32, #tpu.memory_space<vmem>>, vector<2x8x32xf32>
    %1 = vector.shape_cast %0 : vector<2x8x32xf32> to vector<16x32xf32>
    %2 = arith.truncf %1 : vector<16x32xf32> to vector<16x32xbf16>
    %c0_2 = arith.constant 0 : index
    %c0_3 = arith.constant 0 : index
    %3 = vector.load %arg3[%c0_2, %c0_3] : memref<32x96xbf16, #tpu.memory_space<vmem>>, vector<32x96xbf16>
    %cst = arith.constant dense<0.000000e+00> : vector<16x96xf32>
    %4 = tpu.matmul %2, %3, %cst {dimension_numbers = #tpu.dot_dimension_numbers<[1], [0], [0], [1], [0, 0, 1, 1], [], []>} : vector<16x32xbf16>, vector<32x96xbf16>, vector<16x96xf32> -> vector<16x96xf32>
    %c0_4 = arith.constant 0 : index
    %c0_5 = arith.constant 0 : index
    %5 = vector.load %arg4[%c0_4, %c0_5] : memref<1x96xf32, #tpu.memory_space<vmem>>, vector<1x96xf32>
    %6 = vector.broadcast %5 : vector<1x96xf32> to vector<16x96xf32>
    %7 = arith.addf %4, %6 : vector<16x96xf32>
    %8 = vector.extract_strided_slice %7 {offsets = [0, 0], sizes = [8, 32], strides = [1, 1]} : vector<16x96xf32> to vector<8x32xf32>
    %cst_6 = arith.constant 0.353553385 : f32
    %9 = vector.broadcast %cst_6 : f32 to vector<8x32xf32>
    %10 = arith.mulf %8, %9 : vector<8x32xf32>
    %11 = vector.extract_strided_slice %7 {offsets = [0, 32], sizes = [8, 32], strides = [1, 1]} : vector<16x96xf32> to vector<8x32xf32>
    %12 = vector.extract_strided_slice %7 {offsets = [0, 64], sizes = [8, 32], strides = [1, 1]} : vector<16x96xf32> to vector<8x32xf32>
    %13 = vector.extract_strided_slice %10 {offsets = [0, 0], sizes = [8, 8], strides = [1, 1]} : vector<8x32xf32> to vector<8x8xf32>
    %14 = arith.truncf %13 : vector<8x8xf32> to vector<8x8xbf16>
    %15 = vector.extract_strided_slice %11 {offsets = [0, 0], sizes = [8, 8], strides = [1, 1]} : vector<8x32xf32> to vector<8x8xf32>
    %16 = arith.truncf %15 : vector<8x8xf32> to vector<8x8xbf16>
    %17 = vector.extract_strided_slice %12 {offsets = [0, 0], sizes = [8, 8], strides = [1, 1]} : vector<8x32xf32> to vector<8x8xf32>
    %18 = arith.truncf %17 : vector<8x8xf32> to vector<8x8xbf16>
    %cst_7 = arith.constant dense<0.000000e+00> : vector<8x8xf32>
    %19 = tpu.matmul %14, %16, %cst_7 {dimension_numbers = #tpu.dot_dimension_numbers<[1], [1], [0], [0], [0, 0, 1, 0], [], []>} : vector<8x8xbf16>, vector<8x8xbf16>, vector<8x8xf32> -> vector<8x8xf32>
    %cst_8 = arith.constant dense<0xFF800000> : vector<8xf32>
    %20 = vector.multi_reduction <maximumf>, %19, %cst_8 [1] : vector<8x8xf32> to vector<8xf32>
    %21 = vector.shape_cast %20 : vector<8xf32> to vector<8x1xf32>
    %22 = vector.broadcast %21 : vector<8x1xf32> to vector<8x8xf32>
    %23 = arith.subf %19, %22 : vector<8x8xf32>
    %24 = arith.truncf %23 : vector<8x8xf32> to vector<8x8xbf16>
    %25 = math.exp %24 : vector<8x8xbf16>
    %26 = arith.extf %25 : vector<8x8xbf16> to vector<8x8xf32>
    %cst_9 = arith.constant dense<0.000000e+00> : vector<8xf32>
    %27 = vector.multi_reduction <add>, %26, %cst_9 [1] : vector<8x8xf32> to vector<8xf32>
    %28 = vector.shape_cast %27 : vector<8xf32> to vector<8x1xf32>
    %29 = tpu.reciprocal %28 {approx = true} : vector<8x1xf32> -> vector<8x1xf32>
    %30 = vector.broadcast %29 : vector<8x1xf32> to vector<8x8xf32>
    %31 = arith.mulf %26, %30 : vector<8x8xf32>
    %32 = arith.truncf %31 : vector<8x8xf32> to vector<8x8xbf16>
    %cst_10 = arith.constant dense<0.000000e+00> : vector<8x8xf32>
    %33 = tpu.matmul %32, %18, %cst_10 {dimension_numbers = #tpu.dot_dimension_numbers<[1], [0], [0], [1], [0, 0, 1, 1], [], []>} : vector<8x8xbf16>, vector<8x8xbf16>, vector<8x8xf32> -> vector<8x8xf32>
    %34 = vector.extract_strided_slice %10 {offsets = [0, 8], sizes = [8, 8], strides = [1, 1]} : vector<8x32xf32> to vector<8x8xf32>
    %35 = arith.truncf %34 : vector<8x8xf32> to vector<8x8xbf16>
    %36 = vector.extract_strided_slice %11 {offsets = [0, 8], sizes = [8, 8], strides = [1, 1]} : vector<8x32xf32> to vector<8x8xf32>
    %37 = arith.truncf %36 : vector<8x8xf32> to vector<8x8xbf16>
    %38 = vector.extract_strided_slice %12 {offsets = [0, 8], sizes = [8, 8], strides = [1, 1]} : vector<8x32xf32> to vector<8x8xf32>
    %39 = arith.truncf %38 : vector<8x8xf32> to vector<8x8xbf16>
    %cst_11 = arith.constant dense<0.000000e+00> : vector<8x8xf32>
    %40 = tpu.matmul %35, %37, %cst_11 {dimension_numbers = #tpu.dot_dimension_numbers<[1], [1], [0], [0], [0, 0, 1, 0], [], []>} : vector<8x8xbf16>, vector<8x8xbf16>, vector<8x8xf32> -> vector<8x8xf32>
    %cst_12 = arith.constant dense<0xFF800000> : vector<8xf32>
    %41 = vector.multi_reduction <maximumf>, %40, %cst_12 [1] : vector<8x8xf32> to vector<8xf32>
    %42 = vector.shape_cast %41 : vector<8xf32> to vector<8x1xf32>
    %43 = vector.broadcast %42 : vector<8x1xf32> to vector<8x8xf32>
    %44 = arith.subf %40, %43 : vector<8x8xf32>
    %45 = arith.truncf %44 : vector<8x8xf32> to vector<8x8xbf16>
    %46 = math.exp %45 : vector<8x8xbf16>
    %47 = arith.extf %46 : vector<8x8xbf16> to vector<8x8xf32>
    %cst_13 = arith.constant dense<0.000000e+00> : vector<8xf32>
    %48 = vector.multi_reduction <add>, %47, %cst_13 [1] : vector<8x8xf32> to vector<8xf32>
    %49 = vector.shape_cast %48 : vector<8xf32> to vector<8x1xf32>
    %50 = tpu.reciprocal %49 {approx = true} : vector<8x1xf32> -> vector<8x1xf32>
    %51 = vector.broadcast %50 : vector<8x1xf32> to vector<8x8xf32>
    %52 = arith.mulf %47, %51 : vector<8x8xf32>
    %53 = arith.truncf %52 : vector<8x8xf32> to vector<8x8xbf16>
    %cst_14 = arith.constant dense<0.000000e+00> : vector<8x8xf32>
    %54 = tpu.matmul %53, %39, %cst_14 {dimension_numbers = #tpu.dot_dimension_numbers<[1], [0], [0], [1], [0, 0, 1, 1], [], []>} : vector<8x8xbf16>, vector<8x8xbf16>, vector<8x8xf32> -> vector<8x8xf32>
    %55 = tpu.concatenate %33, %54 in 1 : vector<8x8xf32>, vector<8x8xf32> -> vector<8x16xf32>
    %c0_15 = arith.constant 0 : index
    %c0_16 = arith.constant 0 : index
    %c0_17 = arith.constant 0 : index
    %56 = vector.load %arg5[%c0_15, %c0_16, %c0_17] : memref<2x8x32xf32, #tpu.memory_space<vmem>>, vector<1x8x16xf32>
    %57 = vector.shape_cast %56 : vector<1x8x16xf32> to vector<8x16xf32>
    %58 = vector.shape_cast %55 : vector<8x16xf32> to vector<1x8x16xf32>
    tpu.vector_store %arg5[%c0_15, %c0_16, %c0_17], %58 {strides = array<i32>} : memref<2x8x32xf32, #tpu.memory_space<vmem>>, vector<1x8x16xf32>,
    %59 = vector.extract_strided_slice %10 {offsets = [0, 16], sizes = [8, 8], strides = [1, 1]} : vector<8x32xf32> to vector<8x8xf32>
    %60 = arith.truncf %59 : vector<8x8xf32> to vector<8x8xbf16>
    %61 = vector.extract_strided_slice %11 {offsets = [0, 16], sizes = [8, 8], strides = [1, 1]} : vector<8x32xf32> to vector<8x8xf32>
    %62 = arith.truncf %61 : vector<8x8xf32> to vector<8x8xbf16>
    %63 = vector.extract_strided_slice %12 {offsets = [0, 16], sizes = [8, 8], strides = [1, 1]} : vector<8x32xf32> to vector<8x8xf32>
    %64 = arith.truncf %63 : vector<8x8xf32> to vector<8x8xbf16>
    %cst_18 = arith.constant dense<0.000000e+00> : vector<8x8xf32>
    %65 = tpu.matmul %60, %62, %cst_18 {dimension_numbers = #tpu.dot_dimension_numbers<[1], [1], [0], [0], [0, 0, 1, 0], [], []>} : vector<8x8xbf16>, vector<8x8xbf16>, vector<8x8xf32> -> vector<8x8xf32>
    %cst_19 = arith.constant dense<0xFF800000> : vector<8xf32>
    %66 = vector.multi_reduction <maximumf>, %65, %cst_19 [1] : vector<8x8xf32> to vector<8xf32>
    %67 = vector.shape_cast %66 : vector<8xf32> to vector<8x1xf32>
    %68 = vector.broadcast %67 : vector<8x1xf32> to vector<8x8xf32>
    %69 = arith.subf %65, %68 : vector<8x8xf32>
    %70 = arith.truncf %69 : vector<8x8xf32> to vector<8x8xbf16>
    %71 = math.exp %70 : vector<8x8xbf16>
    %72 = arith.extf %71 : vector<8x8xbf16> to vector<8x8xf32>
    %cst_20 = arith.constant dense<0.000000e+00> : vector<8xf32>
    %73 = vector.multi_reduction <add>, %72, %cst_20 [1] : vector<8x8xf32> to vector<8xf32>
    %74 = vector.shape_cast %73 : vector<8xf32> to vector<8x1xf32>
    %75 = tpu.reciprocal %74 {approx = true} : vector<8x1xf32> -> vector<8x1xf32>
    %76 = vector.broadcast %75 : vector<8x1xf32> to vector<8x8xf32>
    %77 = arith.mulf %72, %76 : vector<8x8xf32>
    %78 = arith.truncf %77 : vector<8x8xf32> to vector<8x8xbf16>
    %cst_21 = arith.constant dense<0.000000e+00> : vector<8x8xf32>
    %79 = tpu.matmul %78, %64, %cst_21 {dimension_numbers = #tpu.dot_dimension_numbers<[1], [0], [0], [1], [0, 0, 1, 1], [], []>} : vector<8x8xbf16>, vector<8x8xbf16>, vector<8x8xf32> -> vector<8x8xf32>
    %80 = vector.extract_strided_slice %10 {offsets = [0, 24], sizes = [8, 8], strides = [1, 1]} : vector<8x32xf32> to vector<8x8xf32>
    %81 = arith.truncf %80 : vector<8x8xf32> to vector<8x8xbf16>
    %82 = vector.extract_strided_slice %11 {offsets = [0, 24], sizes = [8, 8], strides = [1, 1]} : vector<8x32xf32> to vector<8x8xf32>
    %83 = arith.truncf %82 : vector<8x8xf32> to vector<8x8xbf16>
    %84 = vector.extract_strided_slice %12 {offsets = [0, 24], sizes = [8, 8], strides = [1, 1]} : vector<8x32xf32> to vector<8x8xf32>
    %85 = arith.truncf %84 : vector<8x8xf32> to vector<8x8xbf16>
    %cst_22 = arith.constant dense<0.000000e+00> : vector<8x8xf32>
    %86 = tpu.matmul %81, %83, %cst_22 {dimension_numbers = #tpu.dot_dimension_numbers<[1], [1], [0], [0], [0, 0, 1, 0], [], []>} : vector<8x8xbf16>, vector<8x8xbf16>, vector<8x8xf32> -> vector<8x8xf32>
    %cst_23 = arith.constant dense<0xFF800000> : vector<8xf32>
    %87 = vector.multi_reduction <maximumf>, %86, %cst_23 [1] : vector<8x8xf32> to vector<8xf32>
    %88 = vector.shape_cast %87 : vector<8xf32> to vector<8x1xf32>
    %89 = vector.broadcast %88 : vector<8x1xf32> to vector<8x8xf32>
    %90 = arith.subf %86, %89 : vector<8x8xf32>
    %91 = arith.truncf %90 : vector<8x8xf32> to vector<8x8xbf16>
    %92 = math.exp %91 : vector<8x8xbf16>
    %93 = arith.extf %92 : vector<8x8xbf16> to vector<8x8xf32>
    %cst_24 = arith.constant dense<0.000000e+00> : vector<8xf32>
    %94 = vector.multi_reduction <add>, %93, %cst_24 [1] : vector<8x8xf32> to vector<8xf32>
    %95 = vector.shape_cast %94 : vector<8xf32> to vector<8x1xf32>
    %96 = tpu.reciprocal %95 {approx = true} : vector<8x1xf32> -> vector<8x1xf32>
    %97 = vector.broadcast %96 : vector<8x1xf32> to vector<8x8xf32>
    %98 = arith.mulf %93, %97 : vector<8x8xf32>
    %99 = arith.truncf %98 : vector<8x8xf32> to vector<8x8xbf16>
    %cst_25 = arith.constant dense<0.000000e+00> : vector<8x8xf32>
    %100 = tpu.matmul %99, %85, %cst_25 {dimension_numbers = #tpu.dot_dimension_numbers<[1], [0], [0], [1], [0, 0, 1, 1], [], []>} : vector<8x8xbf16>, vector<8x8xbf16>, vector<8x8xf32> -> vector<8x8xf32>
    %101 = tpu.concatenate %79, %100 in 1 : vector<8x8xf32>, vector<8x8xf32> -> vector<8x16xf32>
    %c0_26 = arith.constant 0 : index
    %c0_27 = arith.constant 0 : index
    %c16 = arith.constant 16 : index
    %102 = vector.load %arg5[%c0_26, %c0_27, %c16] : memref<2x8x32xf32, #tpu.memory_space<vmem>>, vector<1x8x16xf32>
    %103 = vector.shape_cast %102 : vector<1x8x16xf32> to vector<8x16xf32>
    %104 = vector.shape_cast %101 : vector<8x16xf32> to vector<1x8x16xf32>
    tpu.vector_store %arg5[%c0_26, %c0_27, %c16], %104 {strides = array<i32>} : memref<2x8x32xf32, #tpu.memory_space<vmem>>, vector<1x8x16xf32>,
    %105 = vector.extract_strided_slice %7 {offsets = [8, 0], sizes = [8, 32], strides = [1, 1]} : vector<16x96xf32> to vector<8x32xf32>
    %cst_28 = arith.constant 0.353553385 : f32
    %106 = vector.broadcast %cst_28 : f32 to vector<8x32xf32>
    %107 = arith.mulf %105, %106 : vector<8x32xf32>
    %108 = vector.extract_strided_slice %7 {offsets = [8, 32], sizes = [8, 32], strides = [1, 1]} : vector<16x96xf32> to vector<8x32xf32>
    %109 = vector.extract_strided_slice %7 {offsets = [8, 64], sizes = [8, 32], strides = [1, 1]} : vector<16x96xf32> to vector<8x32xf32>
    %110 = vector.extract_strided_slice %107 {offsets = [0, 0], sizes = [8, 8], strides = [1, 1]} : vector<8x32xf32> to vector<8x8xf32>
    %111 = arith.truncf %110 : vector<8x8xf32> to vector<8x8xbf16>
    %112 = vector.extract_strided_slice %108 {offsets = [0, 0], sizes = [8, 8], strides = [1, 1]} : vector<8x32xf32> to vector<8x8xf32>
    %113 = arith.truncf %112 : vector<8x8xf32> to vector<8x8xbf16>
    %114 = vector.extract_strided_slice %109 {offsets = [0, 0], sizes = [8, 8], strides = [1, 1]} : vector<8x32xf32> to vector<8x8xf32>
    %115 = arith.truncf %114 : vector<8x8xf32> to vector<8x8xbf16>
    %cst_29 = arith.constant dense<0.000000e+00> : vector<8x8xf32>
    %116 = tpu.matmul %111, %113, %cst_29 {dimension_numbers = #tpu.dot_dimension_numbers<[1], [1], [0], [0], [0, 0, 1, 0], [], []>} : vector<8x8xbf16>, vector<8x8xbf16>, vector<8x8xf32> -> vector<8x8xf32>
    %cst_30 = arith.constant dense<0xFF800000> : vector<8xf32>
    %117 = vector.multi_reduction <maximumf>, %116, %cst_30 [1] : vector<8x8xf32> to vector<8xf32>
    %118 = vector.shape_cast %117 : vector<8xf32> to vector<8x1xf32>
    %119 = vector.broadcast %118 : vector<8x1xf32> to vector<8x8xf32>
    %120 = arith.subf %116, %119 : vector<8x8xf32>
    %121 = arith.truncf %120 : vector<8x8xf32> to vector<8x8xbf16>
    %122 = math.exp %121 : vector<8x8xbf16>
    %123 = arith.extf %122 : vector<8x8xbf16> to vector<8x8xf32>
    %cst_31 = arith.constant dense<0.000000e+00> : vector<8xf32>
    %124 = vector.multi_reduction <add>, %123, %cst_31 [1] : vector<8x8xf32> to vector<8xf32>
    %125 = vector.shape_cast %124 : vector<8xf32> to vector<8x1xf32>
    %126 = tpu.reciprocal %125 {approx = true} : vector<8x1xf32> -> vector<8x1xf32>
    %127 = vector.broadcast %126 : vector<8x1xf32> to vector<8x8xf32>
    %128 = arith.mulf %123, %127 : vector<8x8xf32>
    %129 = arith.truncf %128 : vector<8x8xf32> to vector<8x8xbf16>
    %cst_32 = arith.constant dense<0.000000e+00> : vector<8x8xf32>
    %130 = tpu.matmul %129, %115, %cst_32 {dimension_numbers = #tpu.dot_dimension_numbers<[1], [0], [0], [1], [0, 0, 1, 1], [], []>} : vector<8x8xbf16>, vector<8x8xbf16>, vector<8x8xf32> -> vector<8x8xf32>
    %131 = vector.extract_strided_slice %107 {offsets = [0, 8], sizes = [8, 8], strides = [1, 1]} : vector<8x32xf32> to vector<8x8xf32>
    %132 = arith.truncf %131 : vector<8x8xf32> to vector<8x8xbf16>
    %133 = vector.extract_strided_slice %108 {offsets = [0, 8], sizes = [8, 8], strides = [1, 1]} : vector<8x32xf32> to vector<8x8xf32>
    %134 = arith.truncf %133 : vector<8x8xf32> to vector<8x8xbf16>
    %135 = vector.extract_strided_slice %109 {offsets = [0, 8], sizes = [8, 8], strides = [1, 1]} : vector<8x32xf32> to vector<8x8xf32>
    %136 = arith.truncf %135 : vector<8x8xf32> to vector<8x8xbf16>
    %cst_33 = arith.constant dense<0.000000e+00> : vector<8x8xf32>
    %137 = tpu.matmul %132, %134, %cst_33 {dimension_numbers = #tpu.dot_dimension_numbers<[1], [1], [0], [0], [0, 0, 1, 0], [], []>} : vector<8x8xbf16>, vector<8x8xbf16>, vector<8x8xf32> -> vector<8x8xf32>
    %cst_34 = arith.constant dense<0xFF800000> : vector<8xf32>
    %138 = vector.multi_reduction <maximumf>, %137, %cst_34 [1] : vector<8x8xf32> to vector<8xf32>
    %139 = vector.shape_cast %138 : vector<8xf32> to vector<8x1xf32>
    %140 = vector.broadcast %139 : vector<8x1xf32> to vector<8x8xf32>
    %141 = arith.subf %137, %140 : vector<8x8xf32>
    %142 = arith.truncf %141 : vector<8x8xf32> to vector<8x8xbf16>
    %143 = math.exp %142 : vector<8x8xbf16>
    %144 = arith.extf %143 : vector<8x8xbf16> to vector<8x8xf32>
    %cst_35 = arith.constant dense<0.000000e+00> : vector<8xf32>
    %145 = vector.multi_reduction <add>, %144, %cst_35 [1] : vector<8x8xf32> to vector<8xf32>
    %146 = vector.shape_cast %145 : vector<8xf32> to vector<8x1xf32>
    %147 = tpu.reciprocal %146 {approx = true} : vector<8x1xf32> -> vector<8x1xf32>
    %148 = vector.broadcast %147 : vector<8x1xf32> to vector<8x8xf32>
    %149 = arith.mulf %144, %148 : vector<8x8xf32>
    %150 = arith.truncf %149 : vector<8x8xf32> to vector<8x8xbf16>
    %cst_36 = arith.constant dense<0.000000e+00> : vector<8x8xf32>
    %151 = tpu.matmul %150, %136, %cst_36 {dimension_numbers = #tpu.dot_dimension_numbers<[1], [0], [0], [1], [0, 0, 1, 1], [], []>} : vector<8x8xbf16>, vector<8x8xbf16>, vector<8x8xf32> -> vector<8x8xf32>
    %152 = tpu.concatenate %130, %151 in 1 : vector<8x8xf32>, vector<8x8xf32> -> vector<8x16xf32>
    %c1 = arith.constant 1 : index
    %c0_37 = arith.constant 0 : index
    %c0_38 = arith.constant 0 : index
    %153 = vector.load %arg5[%c1, %c0_37, %c0_38] : memref<2x8x32xf32, #tpu.memory_space<vmem>>, vector<1x8x16xf32>
    %154 = vector.shape_cast %153 : vector<1x8x16xf32> to vector<8x16xf32>
    %155 = vector.shape_cast %152 : vector<8x16xf32> to vector<1x8x16xf32>
    tpu.vector_store %arg5[%c1, %c0_37, %c0_38], %155 {strides = array<i32>} : memref<2x8x32xf32, #tpu.memory_space<vmem>>, vector<1x8x16xf32>,
    %156 = vector.extract_strided_slice %107 {offsets = [0, 16], sizes = [8, 8], strides = [1, 1]} : vector<8x32xf32> to vector<8x8xf32>
    %157 = arith.truncf %156 : vector<8x8xf32> to vector<8x8xbf16>
    %158 = vector.extract_strided_slice %108 {offsets = [0, 16], sizes = [8, 8], strides = [1, 1]} : vector<8x32xf32> to vector<8x8xf32>
    %159 = arith.truncf %158 : vector<8x8xf32> to vector<8x8xbf16>
    %160 = vector.extract_strided_slice %109 {offsets = [0, 16], sizes = [8, 8], strides = [1, 1]} : vector<8x32xf32> to vector<8x8xf32>
    %161 = arith.truncf %160 : vector<8x8xf32> to vector<8x8xbf16>
    %cst_39 = arith.constant dense<0.000000e+00> : vector<8x8xf32>
    %162 = tpu.matmul %157, %159, %cst_39 {dimension_numbers = #tpu.dot_dimension_numbers<[1], [1], [0], [0], [0, 0, 1, 0], [], []>} : vector<8x8xbf16>, vector<8x8xbf16>, vector<8x8xf32> -> vector<8x8xf32>
    %cst_40 = arith.constant dense<0xFF800000> : vector<8xf32>
    %163 = vector.multi_reduction <maximumf>, %162, %cst_40 [1] : vector<8x8xf32> to vector<8xf32>
    %164 = vector.shape_cast %163 : vector<8xf32> to vector<8x1xf32>
    %165 = vector.broadcast %164 : vector<8x1xf32> to vector<8x8xf32>
    %166 = arith.subf %162, %165 : vector<8x8xf32>
    %167 = arith.truncf %166 : vector<8x8xf32> to vector<8x8xbf16>
    %168 = math.exp %167 : vector<8x8xbf16>
    %169 = arith.extf %168 : vector<8x8xbf16> to vector<8x8xf32>
    %cst_41 = arith.constant dense<0.000000e+00> : vector<8xf32>
    %170 = vector.multi_reduction <add>, %169, %cst_41 [1] : vector<8x8xf32> to vector<8xf32>
    %171 = vector.shape_cast %170 : vector<8xf32> to vector<8x1xf32>
    %172 = tpu.reciprocal %171 {approx = true} : vector<8x1xf32> -> vector<8x1xf32>
    %173 = vector.broadcast %172 : vector<8x1xf32> to vector<8x8xf32>
    %174 = arith.mulf %169, %173 : vector<8x8xf32>
    %175 = arith.truncf %174 : vector<8x8xf32> to vector<8x8xbf16>
    %cst_42 = arith.constant dense<0.000000e+00> : vector<8x8xf32>
    %176 = tpu.matmul %175, %161, %cst_42 {dimension_numbers = #tpu.dot_dimension_numbers<[1], [0], [0], [1], [0, 0, 1, 1], [], []>} : vector<8x8xbf16>, vector<8x8xbf16>, vector<8x8xf32> -> vector<8x8xf32>
    %177 = vector.extract_strided_slice %107 {offsets = [0, 24], sizes = [8, 8], strides = [1, 1]} : vector<8x32xf32> to vector<8x8xf32>
    %178 = arith.truncf %177 : vector<8x8xf32> to vector<8x8xbf16>
    %179 = vector.extract_strided_slice %108 {offsets = [0, 24], sizes = [8, 8], strides = [1, 1]} : vector<8x32xf32> to vector<8x8xf32>
    %180 = arith.truncf %179 : vector<8x8xf32> to vector<8x8xbf16>
    %181 = vector.extract_strided_slice %109 {offsets = [0, 24], sizes = [8, 8], strides = [1, 1]} : vector<8x32xf32> to vector<8x8xf32>
    %182 = arith.truncf %181 : vector<8x8xf32> to vector<8x8xbf16>
    %cst_43 = arith.constant dense<0.000000e+00> : vector<8x8xf32>
    %183 = tpu.matmul %178, %180, %cst_43 {dimension_numbers = #tpu.dot_dimension_numbers<[1], [1], [0], [0], [0, 0, 1, 0], [], []>} : vector<8x8xbf16>, vector<8x8xbf16>, vector<8x8xf32> -> vector<8x8xf32>
    %cst_44 = arith.constant dense<0xFF800000> : vector<8xf32>
    %184 = vector.multi_reduction <maximumf>, %183, %cst_44 [1] : vector<8x8xf32> to vector<8xf32>
    %185 = vector.shape_cast %184 : vector<8xf32> to vector<8x1xf32>
    %186 = vector.broadcast %185 : vector<8x1xf32> to vector<8x8xf32>
    %187 = arith.subf %183, %186 : vector<8x8xf32>
    %188 = arith.truncf %187 : vector<8x8xf32> to vector<8x8xbf16>
    %189 = math.exp %188 : vector<8x8xbf16>
    %190 = arith.extf %189 : vector<8x8xbf16> to vector<8x8xf32>
    %cst_45 = arith.constant dense<0.000000e+00> : vector<8xf32>
    %191 = vector.multi_reduction <add>, %190, %cst_45 [1] : vector<8x8xf32> to vector<8xf32>
    %192 = vector.shape_cast %191 : vector<8xf32> to vector<8x1xf32>
    %193 = tpu.reciprocal %192 {approx = true} : vector<8x1xf32> -> vector<8x1xf32>
    %194 = vector.broadcast %193 : vector<8x1xf32> to vector<8x8xf32>
    %195 = arith.mulf %190, %194 : vector<8x8xf32>
    %196 = arith.truncf %195 : vector<8x8xf32> to vector<8x8xbf16>
    %cst_46 = arith.constant dense<0.000000e+00> : vector<8x8xf32>
    %197 = tpu.matmul %196, %182, %cst_46 {dimension_numbers = #tpu.dot_dimension_numbers<[1], [0], [0], [1], [0, 0, 1, 1], [], []>} : vector<8x8xbf16>, vector<8x8xbf16>, vector<8x8xf32> -> vector<8x8xf32>
    %198 = tpu.concatenate %176, %197 in 1 : vector<8x8xf32>, vector<8x8xf32> -> vector<8x16xf32>
    %c1_47 = arith.constant 1 : index
    %c0_48 = arith.constant 0 : index
    %c16_49 = arith.constant 16 : index
    %199 = vector.load %arg5[%c1_47, %c0_48, %c16_49] : memref<2x8x32xf32, #tpu.memory_space<vmem>>, vector<1x8x16xf32>
    %200 = vector.shape_cast %199 : vector<1x8x16xf32> to vector<8x16xf32>
    %201 = vector.shape_cast %198 : vector<8x16xf32> to vector<1x8x16xf32>
    tpu.vector_store %arg5[%c1_47, %c0_48, %c16_49], %201 {strides = array<i32>} : memref<2x8x32xf32, #tpu.memory_space<vmem>>, vector<1x8x16xf32>,
    return
  }
  func.func @transform_0(%arg0: i32, %arg1: i32) -> (i32, i32, i32) {
    %c0_i32 = arith.constant 0 : i32
    %c0_i32_0 = arith.constant 0 : i32
    %c0_i32_1 = arith.constant 0 : i32
    return %arg0, %c0_i32, %c0_i32_0 : i32, i32, i32
  }
  func.func @transform_1(%arg0: i32, %arg1: i32) -> (i32, i32) {
    %c0_i32 = arith.constant 0 : i32
    %c0_i32_0 = arith.constant 0 : i32
    return %c0_i32, %arg1 : i32, i32
  }
  func.func @transform_2(%arg0: i32, %arg1: i32) -> (i32, i32) {
    %c0_i32 = arith.constant 0 : i32
    %c0_i32_0 = arith.constant 0 : i32
    return %c0_i32, %arg1 : i32, i32
  }
  func.func @transform_3(%arg0: i32, %arg1: i32) -> (i32, i32, i32) {
    %c0_i32 = arith.constant 0 : i32
    %c0_i32_0 = arith.constant 0 : i32
    return %arg0, %c0_i32, %arg1 : i32, i32, i32
  }
}

module attributes {stable_mosaic.version = 11 : i64} {
  func.func @_fused_kernel(%arg0: i32, %arg1: i32, %arg2: memref<2x8x32xf32, #tpu.memory_space<vmem>>, %arg3: memref<32x96xbf16, #tpu.memory_space<vmem>>, %arg4: memref<1x96xf32, #tpu.memory_space<vmem>>, %arg5: memref<2x8x32xf32, #tpu.memory_space<vmem>>) attributes {dimension_semantics = [#tpu.dimension_semantics<parallel>, #tpu.dimension_semantics<parallel>], iteration_bounds = array<i64: 1, 1>, scalar_prefetch = 0 : i64, scratch_operands = 0 : i64, tpu.core_type = #tpu.core_type<tc>, window_params = [{transform_indices = @transform_0, window_bounds = array<i64: 2, 8, 32>}, {transform_indices = @transform_1, window_bounds = array<i64: 32, 96>}, {transform_indices = @transform_2, window_bounds = array<i64: 1, 96>}, {transform_indices = @transform_3, window_bounds = array<i64: 2, 8, 32>}]} {
    %c0 = arith.constant 0 : index
    %c0_0 = arith.constant 0 : index
    %c0_1 = arith.constant 0 : index
    %0 = vector.load %arg2[%c0, %c0_0, %c0_1] : memref<2x8x32xf32, #tpu.memory_space<vmem>>, vector<2x8x32xf32>
    %1 = vector.shape_cast %0 : vector<2x8x32xf32> to vector<16x32xf32>
    %2 = arith.truncf %1 : vector<16x32xf32> to vector<16x32xbf16>
    %c0_2 = arith.constant 0 : index
    %c0_3 = arith.constant 0 : index
    %3 = vector.load %arg3[%c0_2, %c0_3] : memref<32x96xbf16, #tpu.memory_space<vmem>>, vector<32x96xbf16>
    %cst = arith.constant dense<0.000000e+00> : vector<16x96xf32>
    %4 = tpu.matmul %2, %3, %cst {dimension_numbers = #tpu.dot_dimension_numbers<[1], [0], [0], [1], [0, 0, 1, 1], [], []>} : vector<16x32xbf16>, vector<32x96xbf16>, vector<16x96xf32> -> vector<16x96xf32>
    %c0_4 = arith.constant 0 : index
    %c0_5 = arith.constant 0 : index
    %5 = vector.load %arg4[%c0_4, %c0_5] : memref<1x96xf32, #tpu.memory_space<vmem>>, vector<1x96xf32>
    %6 = vector.broadcast %5 : vector<1x96xf32> to vector<16x96xf32>
    %7 = arith.addf %4, %6 : vector<16x96xf32>
    %8 = vector.extract_strided_slice %7 {offsets = [0, 0], sizes = [8, 32], strides = [1, 1]} : vector<16x96xf32> to vector<8x32xf32>
    %cst_6 = arith.constant 0.353553385 : f32
    %9 = vector.broadcast %cst_6 : f32 to vector<8x32xf32>
    %10 = arith.mulf %8, %9 : vector<8x32xf32>
    %11 = vector.extract_strided_slice %7 {offsets = [0, 32], sizes = [8, 32], strides = [1, 1]} : vector<16x96xf32> to vector<8x32xf32>
    %12 = vector.extract_strided_slice %7 {offsets = [0, 64], sizes = [8, 32], strides = [1, 1]} : vector<16x96xf32> to vector<8x32xf32>
    %13 = vector.extract_strided_slice %10 {offsets = [0, 0], sizes = [8, 8], strides = [1, 1]} : vector<8x32xf32> to vector<8x8xf32>
    %14 = arith.truncf %13 : vector<8x8xf32> to vector<8x8xbf16>
    %15 = vector.extract_strided_slice %11 {offsets = [0, 0], sizes = [8, 8], strides = [1, 1]} : vector<8x32xf32> to vector<8x8xf32>
    %16 = arith.truncf %15 : vector<8x8xf32> to vector<8x8xbf16>
    %17 = vector.extract_strided_slice %12 {offsets = [0, 0], sizes = [8, 8], strides = [1, 1]} : vector<8x32xf32> to vector<8x8xf32>
    %18 = arith.truncf %17 : vector<8x8xf32> to vector<8x8xbf16>
    %cst_7 = arith.constant dense<0.000000e+00> : vector<8x8xf32>
    %19 = tpu.matmul %14, %16, %cst_7 {dimension_numbers = #tpu.dot_dimension_numbers<[1], [1], [0], [0], [0, 0, 1, 0], [], []>} : vector<8x8xbf16>, vector<8x8xbf16>, vector<8x8xf32> -> vector<8x8xf32>
    %cst_8 = arith.constant dense<0xFF800000> : vector<8xf32>
    %20 = vector.multi_reduction <maximumf>, %19, %cst_8 [1] : vector<8x8xf32> to vector<8xf32>
    %21 = vector.shape_cast %20 : vector<8xf32> to vector<8x1xf32>
    %22 = vector.broadcast %21 : vector<8x1xf32> to vector<8x8xf32>
    %23 = arith.subf %19, %22 : vector<8x8xf32>
    %24 = arith.truncf %23 : vector<8x8xf32> to vector<8x8xbf16>
    %25 = math.exp %24 : vector<8x8xbf16>
    %26 = arith.extf %25 : vector<8x8xbf16> to vector<8x8xf32>
    %cst_9 = arith.constant dense<0.000000e+00> : vector<8xf32>
    %27 = vector.multi_reduction <add>, %26, %cst_9 [1] : vector<8x8xf32> to vector<8xf32>
    %28 = vector.shape_cast %27 : vector<8xf32> to vector<8x1xf32>
    %29 = tpu.reciprocal %28 {approx = true} : vector<8x1xf32> -> vector<8x1xf32>
    %30 = vector.broadcast %29 : vector<8x1xf32> to vector<8x8xf32>
    %31 = arith.mulf %26, %30 : vector<8x8xf32>
    %32 = arith.truncf %31 : vector<8x8xf32> to vector<8x8xbf16>
    %cst_10 = arith.constant dense<0.000000e+00> : vector<8x8xf32>
    %33 = tpu.matmul %32, %18, %cst_10 {dimension_numbers = #tpu.dot_dimension_numbers<[1], [0], [0], [1], [0, 0, 1, 1], [], []>} : vector<8x8xbf16>, vector<8x8xbf16>, vector<8x8xf32> -> vector<8x8xf32>
    %34 = vector.extract_strided_slice %10 {offsets = [0, 8], sizes = [8, 8], strides = [1, 1]} : vector<8x32xf32> to vector<8x8xf32>
    %35 = arith.truncf %34 : vector<8x8xf32> to vector<8x8xbf16>
    %36 = vector.extract_strided_slice %11 {offsets = [0, 8], sizes = [8, 8], strides = [1, 1]} : vector<8x32xf32> to vector<8x8xf32>
    %37 = arith.truncf %36 : vector<8x8xf32> to vector<8x8xbf16>
    %38 = vector.extract_strided_slice %12 {offsets = [0, 8], sizes = [8, 8], strides = [1, 1]} : vector<8x32xf32> to vector<8x8xf32>
    %39 = arith.truncf %38 : vector<8x8xf32> to vector<8x8xbf16>
    %cst_11 = arith.constant dense<0.000000e+00> : vector<8x8xf32>
    %40 = tpu.matmul %35, %37, %cst_11 {dimension_numbers = #tpu.dot_dimension_numbers<[1], [1], [0], [0], [0, 0, 1, 0], [], []>} : vector<8x8xbf16>, vector<8x8xbf16>, vector<8x8xf32> -> vector<8x8xf32>
    %cst_12 = arith.constant dense<0xFF800000> : vector<8xf32>
    %41 = vector.multi_reduction <maximumf>, %40, %cst_12 [1] : vector<8x8xf32> to vector<8xf32>
    %42 = vector.shape_cast %41 : vector<8xf32> to vector<8x1xf32>
    %43 = vector.broadcast %42 : vector<8x1xf32> to vector<8x8xf32>
    %44 = arith.subf %40, %43 : vector<8x8xf32>
    %45 = arith.truncf %44 : vector<8x8xf32> to vector<8x8xbf16>
    %46 = math.exp %45 : vector<8x8xbf16>
    %47 = arith.extf %46 : vector<8x8xbf16> to vector<8x8xf32>
    %cst_13 = arith.constant dense<0.000000e+00> : vector<8xf32>
    %48 = vector.multi_reduction <add>, %47, %cst_13 [1] : vector<8x8xf32> to vector<8xf32>
    %49 = vector.shape_cast %48 : vector<8xf32> to vector<8x1xf32>
    %50 = tpu.reciprocal %49 {approx = true} : vector<8x1xf32> -> vector<8x1xf32>
    %51 = vector.broadcast %50 : vector<8x1xf32> to vector<8x8xf32>
    %52 = arith.mulf %47, %51 : vector<8x8xf32>
    %53 = arith.truncf %52 : vector<8x8xf32> to vector<8x8xbf16>
    %cst_14 = arith.constant dense<0.000000e+00> : vector<8x8xf32>
    %54 = tpu.matmul %53, %39, %cst_14 {dimension_numbers = #tpu.dot_dimension_numbers<[1], [0], [0], [1], [0, 0, 1, 1], [], []>} : vector<8x8xbf16>, vector<8x8xbf16>, vector<8x8xf32> -> vector<8x8xf32>
    %55 = tpu.concatenate %33, %54 in 1 : vector<8x8xf32>, vector<8x8xf32> -> vector<8x16xf32>
    %c0_15 = arith.constant 0 : index
    %c0_16 = arith.constant 0 : index
    %c0_17 = arith.constant 0 : index
    %56 = vector.load %arg5[%c0_15, %c0_16, %c0_17] : memref<2x8x32xf32, #tpu.memory_space<vmem>>, vector<1x8x16xf32>
    %57 = vector.shape_cast %56 : vector<1x8x16xf32> to vector<8x16xf32>
    %58 = vector.shape_cast %55 : vector<8x16xf32> to vector<1x8x16xf32>
    tpu.vector_store %arg5[%c0_15, %c0_16, %c0_17], %58 {strides = array<i32>} : memref<2x8x32xf32, #tpu.memory_space<vmem>>, vector<1x8x16xf32>,
    %59 = vector.extract_strided_slice %10 {offsets = [0, 16], sizes = [8, 8], strides = [1, 1]} : vector<8x32xf32> to vector<8x8xf32>
    %60 = arith.truncf %59 : vector<8x8xf32> to vector<8x8xbf16>
    %61 = vector.extract_strided_slice %11 {offsets = [0, 16], sizes = [8, 8], strides = [1, 1]} : vector<8x32xf32> to vector<8x8xf32>
    %62 = arith.truncf %61 : vector<8x8xf32> to vector<8x8xbf16>
    %63 = vector.extract_strided_slice %12 {offsets = [0, 16], sizes = [8, 8], strides = [1, 1]} : vector<8x32xf32> to vector<8x8xf32>
    %64 = arith.truncf %63 : vector<8x8xf32> to vector<8x8xbf16>
    %cst_18 = arith.constant dense<0.000000e+00> : vector<8x8xf32>
    %65 = tpu.matmul %60, %62, %cst_18 {dimension_numbers = #tpu.dot_dimension_numbers<[1], [1], [0], [0], [0, 0, 1, 0], [], []>} : vector<8x8xbf16>, vector<8x8xbf16>, vector<8x8xf32> -> vector<8x8xf32>
    %cst_19 = arith.constant dense<0xFF800000> : vector<8xf32>
    %66 = vector.multi_reduction <maximumf>, %65, %cst_19 [1] : vector<8x8xf32> to vector<8xf32>
    %67 = vector.shape_cast %66 : vector<8xf32> to vector<8x1xf32>
    %68 = vector.broadcast %67 : vector<8x1xf32> to vector<8x8xf32>
    %69 = arith.subf %65, %68 : vector<8x8xf32>
    %70 = arith.truncf %69 : vector<8x8xf32> to vector<8x8xbf16>
    %71 = math.exp %70 : vector<8x8xbf16>
    %72 = arith.extf %71 : vector<8x8xbf16> to vector<8x8xf32>
    %cst_20 = arith.constant dense<0.000000e+00> : vector<8xf32>
    %73 = vector.multi_reduction <add>, %72, %cst_20 [1] : vector<8x8xf32> to vector<8xf32>
    %74 = vector.shape_cast %73 : vector<8xf32> to vector<8x1xf32>
    %75 = tpu.reciprocal %74 {approx = true} : vector<8x1xf32> -> vector<8x1xf32>
    %76 = vector.broadcast %75 : vector<8x1xf32> to vector<8x8xf32>
    %77 = arith.mulf %72, %76 : vector<8x8xf32>
    %78 = arith.truncf %77 : vector<8x8xf32> to vector<8x8xbf16>
    %cst_21 = arith.constant dense<0.000000e+00> : vector<8x8xf32>
    %79 = tpu.matmul %78, %64, %cst_21 {dimension_numbers = #tpu.dot_dimension_numbers<[1], [0], [0], [1], [0, 0, 1, 1], [], []>} : vector<8x8xbf16>, vector<8x8xbf16>, vector<8x8xf32> -> vector<8x8xf32>
    %80 = vector.extract_strided_slice %10 {offsets = [0, 24], sizes = [8, 8], strides = [1, 1]} : vector<8x32xf32> to vector<8x8xf32>
    %81 = arith.truncf %80 : vector<8x8xf32> to vector<8x8xbf16>
    %82 = vector.extract_strided_slice %11 {offsets = [0, 24], sizes = [8, 8], strides = [1, 1]} : vector<8x32xf32> to vector<8x8xf32>
    %83 = arith.truncf %82 : vector<8x8xf32> to vector<8x8xbf16>
    %84 = vector.extract_strided_slice %12 {offsets = [0, 24], sizes = [8, 8], strides = [1, 1]} : vector<8x32xf32> to vector<8x8xf32>
    %85 = arith.truncf %84 : vector<8x8xf32> to vector<8x8xbf16>
    %cst_22 = arith.constant dense<0.000000e+00> : vector<8x8xf32>
    %86 = tpu.matmul %81, %83, %cst_22 {dimension_numbers = #tpu.dot_dimension_numbers<[1], [1], [0], [0], [0, 0, 1, 0], [], []>} : vector<8x8xbf16>, vector<8x8xbf16>, vector<8x8xf32> -> vector<8x8xf32>
    %cst_23 = arith.constant dense<0xFF800000> : vector<8xf32>
    %87 = vector.multi_reduction <maximumf>, %86, %cst_23 [1] : vector<8x8xf32> to vector<8xf32>
    %88 = vector.shape_cast %87 : vector<8xf32> to vector<8x1xf32>
    %89 = vector.broadcast %88 : vector<8x1xf32> to vector<8x8xf32>
    %90 = arith.subf %86, %89 : vector<8x8xf32>
    %91 = arith.truncf %90 : vector<8x8xf32> to vector<8x8xbf16>
    %92 = math.exp %91 : vector<8x8xbf16>
    %93 = arith.extf %92 : vector<8x8xbf16> to vector<8x8xf32>
    %cst_24 = arith.constant dense<0.000000e+00> : vector<8xf32>
    %94 = vector.multi_reduction <add>, %93, %cst_24 [1] : vector<8x8xf32> to vector<8xf32>
    %95 = vector.shape_cast %94 : vector<8xf32> to vector<8x1xf32>
    %96 = tpu.reciprocal %95 {approx = true} : vector<8x1xf32> -> vector<8x1xf32>
    %97 = vector.broadcast %96 : vector<8x1xf32> to vector<8x8xf32>
    %98 = arith.mulf %93, %97 : vector<8x8xf32>
    %99 = arith.truncf %98 : vector<8x8xf32> to vector<8x8xbf16>
    %cst_25 = arith.constant dense<0.000000e+00> : vector<8x8xf32>
    %100 = tpu.matmul %99, %85, %cst_25 {dimension_numbers = #tpu.dot_dimension_numbers<[1], [0], [0], [1], [0, 0, 1, 1], [], []>} : vector<8x8xbf16>, vector<8x8xbf16>, vector<8x8xf32> -> vector<8x8xf32>
    %101 = tpu.concatenate %79, %100 in 1 : vector<8x8xf32>, vector<8x8xf32> -> vector<8x16xf32>
    %c0_26 = arith.constant 0 : index
    %c0_27 = arith.constant 0 : index
    %c16 = arith.constant 16 : index
    %102 = vector.load %arg5[%c0_26, %c0_27, %c16] : memref<2x8x32xf32, #tpu.memory_space<vmem>>, vector<1x8x16xf32>
    %103 = vector.shape_cast %102 : vector<1x8x16xf32> to vector<8x16xf32>
    %104 = vector.shape_cast %101 : vector<8x16xf32> to vector<1x8x16xf32>
    tpu.vector_store %arg5[%c0_26, %c0_27, %c16], %104 {strides = array<i32>} : memref<2x8x32xf32, #tpu.memory_space<vmem>>, vector<1x8x16xf32>,
    %105 = vector.extract_strided_slice %7 {offsets = [8, 0], sizes = [8, 32], strides = [1, 1]} : vector<16x96xf32> to vector<8x32xf32>
    %cst_28 = arith.constant 0.353553385 : f32
    %106 = vector.broadcast %cst_28 : f32 to vector<8x32xf32>
    %107 = arith.mulf %105, %106 : vector<8x32xf32>
    %108 = vector.extract_strided_slice %7 {offsets = [8, 32], sizes = [8, 32], strides = [1, 1]} : vector<16x96xf32> to vector<8x32xf32>
    %109 = vector.extract_strided_slice %7 {offsets = [8, 64], sizes = [8, 32], strides = [1, 1]} : vector<16x96xf32> to vector<8x32xf32>
    %110 = vector.extract_strided_slice %107 {offsets = [0, 0], sizes = [8, 8], strides = [1, 1]} : vector<8x32xf32> to vector<8x8xf32>
    %111 = arith.truncf %110 : vector<8x8xf32> to vector<8x8xbf16>
    %112 = vector.extract_strided_slice %108 {offsets = [0, 0], sizes = [8, 8], strides = [1, 1]} : vector<8x32xf32> to vector<8x8xf32>
    %113 = arith.truncf %112 : vector<8x8xf32> to vector<8x8xbf16>
    %114 = vector.extract_strided_slice %109 {offsets = [0, 0], sizes = [8, 8], strides = [1, 1]} : vector<8x32xf32> to vector<8x8xf32>
    %115 = arith.truncf %114 : vector<8x8xf32> to vector<8x8xbf16>
    %cst_29 = arith.constant dense<0.000000e+00> : vector<8x8xf32>
    %116 = tpu.matmul %111, %113, %cst_29 {dimension_numbers = #tpu.dot_dimension_numbers<[1], [1], [0], [0], [0, 0, 1, 0], [], []>} : vector<8x8xbf16>, vector<8x8xbf16>, vector<8x8xf32> -> vector<8x8xf32>
    %cst_30 = arith.constant dense<0xFF800000> : vector<8xf32>
    %117 = vector.multi_reduction <maximumf>, %116, %cst_30 [1] : vector<8x8xf32> to vector<8xf32>
    %118 = vector.shape_cast %117 : vector<8xf32> to vector<8x1xf32>
    %119 = vector.broadcast %118 : vector<8x1xf32> to vector<8x8xf32>
    %120 = arith.subf %116, %119 : vector<8x8xf32>
    %121 = arith.truncf %120 : vector<8x8xf32> to vector<8x8xbf16>
    %122 = math.exp %121 : vector<8x8xbf16>
    %123 = arith.extf %122 : vector<8x8xbf16> to vector<8x8xf32>
    %cst_31 = arith.constant dense<0.000000e+00> : vector<8xf32>
    %124 = vector.multi_reduction <add>, %123, %cst_31 [1] : vector<8x8xf32> to vector<8xf32>
    %125 = vector.shape_cast %124 : vector<8xf32> to vector<8x1xf32>
    %126 = tpu.reciprocal %125 {approx = true} : vector<8x1xf32> -> vector<8x1xf32>
    %127 = vector.broadcast %126 : vector<8x1xf32> to vector<8x8xf32>
    %128 = arith.mulf %123, %127 : vector<8x8xf32>
    %129 = arith.truncf %128 : vector<8x8xf32> to vector<8x8xbf16>
    %cst_32 = arith.constant dense<0.000000e+00> : vector<8x8xf32>
    %130 = tpu.matmul %129, %115, %cst_32 {dimension_numbers = #tpu.dot_dimension_numbers<[1], [0], [0], [1], [0, 0, 1, 1], [], []>} : vector<8x8xbf16>, vector<8x8xbf16>, vector<8x8xf32> -> vector<8x8xf32>
    %131 = vector.extract_strided_slice %107 {offsets = [0, 8], sizes = [8, 8], strides = [1, 1]} : vector<8x32xf32> to vector<8x8xf32>
    %132 = arith.truncf %131 : vector<8x8xf32> to vector<8x8xbf16>
    %133 = vector.extract_strided_slice %108 {offsets = [0, 8], sizes = [8, 8], strides = [1, 1]} : vector<8x32xf32> to vector<8x8xf32>
    %134 = arith.truncf %133 : vector<8x8xf32> to vector<8x8xbf16>
    %135 = vector.extract_strided_slice %109 {offsets = [0, 8], sizes = [8, 8], strides = [1, 1]} : vector<8x32xf32> to vector<8x8xf32>
    %136 = arith.truncf %135 : vector<8x8xf32> to vector<8x8xbf16>
    %cst_33 = arith.constant dense<0.000000e+00> : vector<8x8xf32>
    %137 = tpu.matmul %132, %134, %cst_33 {dimension_numbers = #tpu.dot_dimension_numbers<[1], [1], [0], [0], [0, 0, 1, 0], [], []>} : vector<8x8xbf16>, vector<8x8xbf16>, vector<8x8xf32> -> vector<8x8xf32>
    %cst_34 = arith.constant dense<0xFF800000> : vector<8xf32>
    %138 = vector.multi_reduction <maximumf>, %137, %cst_34 [1] : vector<8x8xf32> to vector<8xf32>
    %139 = vector.shape_cast %138 : vector<8xf32> to vector<8x1xf32>
    %140 = vector.broadcast %139 : vector<8x1xf32> to vector<8x8xf32>
    %141 = arith.subf %137, %140 : vector<8x8xf32>
    %142 = arith.truncf %141 : vector<8x8xf32> to vector<8x8xbf16>
    %143 = math.exp %142 : vector<8x8xbf16>
    %144 = arith.extf %143 : vector<8x8xbf16> to vector<8x8xf32>
    %cst_35 = arith.constant dense<0.000000e+00> : vector<8xf32>
    %145 = vector.multi_reduction <add>, %144, %cst_35 [1] : vector<8x8xf32> to vector<8xf32>
    %146 = vector.shape_cast %145 : vector<8xf32> to vector<8x1xf32>
    %147 = tpu.reciprocal %146 {approx = true} : vector<8x1xf32> -> vector<8x1xf32>
    %148 = vector.broadcast %147 : vector<8x1xf32> to vector<8x8xf32>
    %149 = arith.mulf %144, %148 : vector<8x8xf32>
    %150 = arith.truncf %149 : vector<8x8xf32> to vector<8x8xbf16>
    %cst_36 = arith.constant dense<0.000000e+00> : vector<8x8xf32>
    %151 = tpu.matmul %150, %136, %cst_36 {dimension_numbers = #tpu.dot_dimension_numbers<[1], [0], [0], [1], [0, 0, 1, 1], [], []>} : vector<8x8xbf16>, vector<8x8xbf16>, vector<8x8xf32> -> vector<8x8xf32>
    %152 = tpu.concatenate %130, %151 in 1 : vector<8x8xf32>, vector<8x8xf32> -> vector<8x16xf32>
    %c1 = arith.constant 1 : index
    %c0_37 = arith.constant 0 : index
    %c0_38 = arith.constant 0 : index
    %153 = vector.load %arg5[%c1, %c0_37, %c0_38] : memref<2x8x32xf32, #tpu.memory_space<vmem>>, vector<1x8x16xf32>
    %154 = vector.shape_cast %153 : vector<1x8x16xf32> to vector<8x16xf32>
    %155 = vector.shape_cast %152 : vector<8x16xf32> to vector<1x8x16xf32>
    tpu.vector_store %arg5[%c1, %c0_37, %c0_38], %155 {strides = array<i32>} : memref<2x8x32xf32, #tpu.memory_space<vmem>>, vector<1x8x16xf32>,
    %156 = vector.extract_strided_slice %107 {offsets = [0, 16], sizes = [8, 8], strides = [1, 1]} : vector<8x32xf32> to vector<8x8xf32>
    %157 = arith.truncf %156 : vector<8x8xf32> to vector<8x8xbf16>
    %158 = vector.extract_strided_slice %108 {offsets = [0, 16], sizes = [8, 8], strides = [1, 1]} : vector<8x32xf32> to vector<8x8xf32>
    %159 = arith.truncf %158 : vector<8x8xf32> to vector<8x8xbf16>
    %160 = vector.extract_strided_slice %109 {offsets = [0, 16], sizes = [8, 8], strides = [1, 1]} : vector<8x32xf32> to vector<8x8xf32>
    %161 = arith.truncf %160 : vector<8x8xf32> to vector<8x8xbf16>
    %cst_39 = arith.constant dense<0.000000e+00> : vector<8x8xf32>
    %162 = tpu.matmul %157, %159, %cst_39 {dimension_numbers = #tpu.dot_dimension_numbers<[1], [1], [0], [0], [0, 0, 1, 0], [], []>} : vector<8x8xbf16>, vector<8x8xbf16>, vector<8x8xf32> -> vector<8x8xf32>
    %cst_40 = arith.constant dense<0xFF800000> : vector<8xf32>
    %163 = vector.multi_reduction <maximumf>, %162, %cst_40 [1] : vector<8x8xf32> to vector<8xf32>
    %164 = vector.shape_cast %163 : vector<8xf32> to vector<8x1xf32>
    %165 = vector.broadcast %164 : vector<8x1xf32> to vector<8x8xf32>
    %166 = arith.subf %162, %165 : vector<8x8xf32>
    %167 = arith.truncf %166 : vector<8x8xf32> to vector<8x8xbf16>
    %168 = math.exp %167 : vector<8x8xbf16>
    %169 = arith.extf %168 : vector<8x8xbf16> to vector<8x8xf32>
    %cst_41 = arith.constant dense<0.000000e+00> : vector<8xf32>
    %170 = vector.multi_reduction <add>, %169, %cst_41 [1] : vector<8x8xf32> to vector<8xf32>
    %171 = vector.shape_cast %170 : vector<8xf32> to vector<8x1xf32>
    %172 = tpu.reciprocal %171 {approx = true} : vector<8x1xf32> -> vector<8x1xf32>
    %173 = vector.broadcast %172 : vector<8x1xf32> to vector<8x8xf32>
    %174 = arith.mulf %169, %173 : vector<8x8xf32>
    %175 = arith.truncf %174 : vector<8x8xf32> to vector<8x8xbf16>
    %cst_42 = arith.constant dense<0.000000e+00> : vector<8x8xf32>
    %176 = tpu.matmul %175, %161, %cst_42 {dimension_numbers = #tpu.dot_dimension_numbers<[1], [0], [0], [1], [0, 0, 1, 1], [], []>} : vector<8x8xbf16>, vector<8x8xbf16>, vector<8x8xf32> -> vector<8x8xf32>
    %177 = vector.extract_strided_slice %107 {offsets = [0, 24], sizes = [8, 8], strides = [1, 1]} : vector<8x32xf32> to vector<8x8xf32>
    %178 = arith.truncf %177 : vector<8x8xf32> to vector<8x8xbf16>
    %179 = vector.extract_strided_slice %108 {offsets = [0, 24], sizes = [8, 8], strides = [1, 1]} : vector<8x32xf32> to vector<8x8xf32>
    %180 = arith.truncf %179 : vector<8x8xf32> to vector<8x8xbf16>
    %181 = vector.extract_strided_slice %109 {offsets = [0, 24], sizes = [8, 8], strides = [1, 1]} : vector<8x32xf32> to vector<8x8xf32>
    %182 = arith.truncf %181 : vector<8x8xf32> to vector<8x8xbf16>
    %cst_43 = arith.constant dense<0.000000e+00> : vector<8x8xf32>
    %183 = tpu.matmul %178, %180, %cst_43 {dimension_numbers = #tpu.dot_dimension_numbers<[1], [1], [0], [0], [0, 0, 1, 0], [], []>} : vector<8x8xbf16>, vector<8x8xbf16>, vector<8x8xf32> -> vector<8x8xf32>
    %cst_44 = arith.constant dense<0xFF800000> : vector<8xf32>
    %184 = vector.multi_reduction <maximumf>, %183, %cst_44 [1] : vector<8x8xf32> to vector<8xf32>
    %185 = vector.shape_cast %184 : vector<8xf32> to vector<8x1xf32>
    %186 = vector.broadcast %185 : vector<8x1xf32> to vector<8x8xf32>
    %187 = arith.subf %183, %186 : vector<8x8xf32>
    %188 = arith.truncf %187 : vector<8x8xf32> to vector<8x8xbf16>
    %189 = math.exp %188 : vector<8x8xbf16>
    %190 = arith.extf %189 : vector<8x8xbf16> to vector<8x8xf32>
    %cst_45 = arith.constant dense<0.000000e+00> : vector<8xf32>
    %191 = vector.multi_reduction <add>, %190, %cst_45 [1] : vector<8x8xf32> to vector<8xf32>
    %192 = vector.shape_cast %191 : vector<8xf32> to vector<8x1xf32>
    %193 = tpu.reciprocal %192 {approx = true} : vector<8x1xf32> -> vector<8x1xf32>
    %194 = vector.broadcast %193 : vector<8x1xf32> to vector<8x8xf32>
    %195 = arith.mulf %190, %194 : vector<8x8xf32>
    %196 = arith.truncf %195 : vector<8x8xf32> to vector<8x8xbf16>
    %cst_46 = arith.constant dense<0.000000e+00> : vector<8x8xf32>
    %197 = tpu.matmul %196, %182, %cst_46 {dimension_numbers = #tpu.dot_dimension_numbers<[1], [0], [0], [1], [0, 0, 1, 1], [], []>} : vector<8x8xbf16>, vector<8x8xbf16>, vector<8x8xf32> -> vector<8x8xf32>
    %198 = tpu.concatenate %176, %197 in 1 : vector<8x8xf32>, vector<8x8xf32> -> vector<8x16xf32>
    %c1_47 = arith.constant 1 : index
    %c0_48 = arith.constant 0 : index
    %c16_49 = arith.constant 16 : index
    %199 = vector.load %arg5[%c1_47, %c0_48, %c16_49] : memref<2x8x32xf32, #tpu.memory_space<vmem>>, vector<1x8x16xf32>
    %200 = vector.shape_cast %199 : vector<1x8x16xf32> to vector<8x16xf32>
    %201 = vector.shape_cast %198 : vector<8x16xf32> to vector<1x8x16xf32>
    tpu.vector_store %arg5[%c1_47, %c0_48, %c16_49], %201 {strides = array<i32>} : memref<2x8x32xf32, #tpu.memory_space<vmem>>, vector<1x8x16xf32>,
    return
  }
  func.func @transform_0(%arg0: i32, %arg1: i32) -> (i32, i32, i32) {
    %c0_i32 = arith.constant 0 : i32
    %c0_i32_0 = arith.constant 0 : i32
    %c0_i32_1 = arith.constant 0 : i32
    return %arg0, %c0_i32, %c0_i32_0 : i32, i32, i32
  }
  func.func @transform_1(%arg0: i32, %arg1: i32) -> (i32, i32) {
    %c0_i32 = arith.constant 0 : i32
    %c0_i32_0 = arith.constant 0 : i32
    return %c0_i32, %arg1 : i32, i32
  }
  func.func @transform_2(%arg0: i32, %arg1: i32) -> (i32, i32) {
    %c0_i32 = arith.constant 0 : i32
    %c0_i32_0 = arith.constant 0 : i32
    return %c0_i32, %arg1 : i32, i32
  }
  func.func @transform_3(%arg0: i32, %arg1: i32) -> (i32, i32, i32) {
    %c0_i32 = arith.constant 0 : i32
    %c0_i32_0 = arith.constant 0 : i32
    return %arg0, %c0_i32, %arg1 : i32, i32, i32
  }
}

</mosaic_0001>

<bundles_post_ra>
// kernel: tpu_custom_call.1
= control target key start
LH: loop header
LB: loop body
LE: loop exit
PB: predicated region body
PF: predicated region fallthrough
CT: control target
= control target key end

     0   :  { %8 = vsyncpa [#allocation3], 0  ;;  %s1660_s0 = inlined_call_operand.hbm [shape: f32[2,8,32], index: 0, kind: input, shape index: {}]   ;;  %s1661_s1 = inlined_call_operand.hbm [shape: bf16[32,96], index: 1, kind: input, shape index: {}]   ;;  %s1662_s2 = inlined_call_operand.vmem [shape: f32[1,96], index: 2, kind: input, shape index: {}]   ;;  %s1663_s3 = inlined_call_operand.hbm [shape: f32[2,8,32], index: 3, kind: output, shape index: {}]  }
   0x1   :  { %9 = vsyncpa [#allocation6], 0 }
   0x2   :  { %10 = vsyncpa [#allocation4], 0  ;;  %s1365_s12 = smov [#allocation2]   ;;  %s1293_s16 = scalar_lea.hbm %s1660_s0, 256 }
   0x3   :  { %s16_s13 = sshll.u32 %s1365_s12, 4  ;;  %p1294_p0 = scmp.ne.s32.totalorder %s1660_s0, %s1293_s16  ;;  %s17_s13 = int_to_ptr.vmem [resolvable:$true] %s16_s13 }
   0x4   :  { %p1297_p1 = scmp.lt.u32.totalorder %s1293_s16, %s1660_s0 }
   0x6   :  { %p1299_p2 = pnand %p1297_p1, %p1294_p0 }
   0x8   :  { %1302 = shalt.err (!%p1299_p2)
}
   0x9   :  { %s1303_s21 = scalar_lea.vmem %s17_s13, 256  ;;  %p1308_p4 = scmp.lt.s32.totalorder %s17_s13, %s17_s13 }
   0xa   :  { %p1304_p3 = scmp.ne.s32.totalorder %s17_s13, %s1303_s21  ;;  %p1309_p5 = scmp.lt.s32.totalorder %s1303_s21, %s1303_s21 }
   0xc   :  { %p1310_p6 = por %p1309_p5, %p1308_p4 }
   0xe   :  { %p1311_p7 = pnand %p1310_p6, %p1304_p3 }
  0x10   :  { %1314 = shalt.err (!%p1311_p7)
}
  0x11   :  { %s1366_s22 = smov 128   ;;  %s1367_s23 = smov 8  }
  0x12   :  { %22 = dma.hbm_to_vmem [thread:$0]  %s1660_s0, 256, %s17_s13, [#allocation3], %s1366_s22, %s1366_s22, %s1367_s23  }
  0x13   :  { %s1368_s26 = smov [#allocation5]   ;;  %s1315_s30 = scalar_lea.hbm %s1661_s1, 256 }
  0x14   :  { %s28_s27 = sshll.u32 %s1368_s26, 4  ;;  %p1316_p8 = scmp.ne.s32.totalorder %s1661_s1, %s1315_s30  ;;  %s29_s27 = int_to_ptr.vmem [resolvable:$true] %s28_s27 }
  0x15   :  { %p1319_p9 = scmp.lt.u32.totalorder %s1315_s30, %s1661_s1 }
  0x17   :  { %p1321_p10 = pnand %p1319_p9, %p1316_p8 }
  0x19   :  { %1324 = shalt.err (!%p1321_p10)
}
  0x1a   :  { %s1325_s8 = scalar_lea.vmem %s29_s27, 256  ;;  %p1330_p12 = scmp.lt.s32.totalorder %s29_s27, %s29_s27 }
  0x1b   :  { %p1326_p11 = scmp.ne.s32.totalorder %s29_s27, %s1325_s8  ;;  %p1331_p13 = scmp.lt.s32.totalorder %s1325_s8, %s1325_s8 }
  0x1d   :  { %p1332_p0 = por %p1331_p13, %p1330_p12 }
  0x1f   :  { %p1333_p1 = pnand %p1332_p0, %p1326_p11 }
  0x21   :  { %1336 = shalt.err (!%p1333_p1)
}
  0x22   :  { %s1369_s0 = smov 64   ;;  %s1370_s9 = smov 4  }
  0x23   :  { %34 = dma.hbm_to_vmem [thread:$0]  %s1661_s1, 256, %s29_s27, [#allocation6], %s1369_s0, %s1369_s0, %s1370_s9  }
  0x24   :  { %1359 = dma.done.wait [#allocation3], 256  }
  0x25   :  { %1360 = vsyncadd [#allocation3], 4294967040 }
  0x26   :  { %1361 = dma.done.wait [#allocation6], 256  }
  0x27   :  { %1362 = vsyncadd [#allocation6], 4294967040  ;;  %v1371_v0 = vmov 0.0   ;;  %vm1372_vm0 = vmmov 0   ;;  %v1259_v1 = vld [vmem:[#allocation5] sm:$0xff]   ;;  %v1260_v2 = vld [vmem:[#allocation5 + $0x8] sm:$0xff]  }
  0x28   :  { %1135 = vmatprep.subr.bf16.mxu0 %v1371_v0  ;;  %1139 = vmatprep.mubr.msk.bf16.mxu0 %vm1372_vm0, %v1371_v0  ;;  %v44_v3 = vld [vmem:[#allocation2] sm:$0xff]  ;;  %v45_v4 = vld [vmem:[#allocation2 + $0x8] sm:$0xff]  ;;  %vm70_vm1 = vcmask 261120   ;;  %s1373_s13 = smov 96   ;;  %s1374_s14 = smov 120   ;;  %vm121_vm2 = vcmask 64512  }
  0x29   :  { %1143 = vmatprep.subr.bf16.mxu1 %v1371_v0  ;;  %1145 = vmatprep.mubr.msk.bf16.mxu1 %vm1372_vm0, %v1371_v0  ;;  %v46_v5 = vpack.c.bf16 %v45_v4, %v44_v3  ;;  %v1080_v6 = vld [vmem:[%s1662_s2] ss:$0 sm:$0xff]  ;;  %s1375_s15 = smov 88   ;;  %s1376_s16 = smov 80   ;;  %vm188_vm3 = vcmask 1043456   ;;  %vm351_vm4 = vcmask 130048  }
  0x2a   :  { %1136 = vmatpush3.bf16.msra.mxu0 %v1259_v1  ;;  %s1377_s2 = smov 112   ;;  %s1378_s17 = smov 72   ;;  %vm588_vm5 = vcmask 261248  }
  0x2b   :  { %1137 = vmatprep.subr.bf16.mxu0 %v1371_v0  ;;  %s1379_s18 = smov 104   ;;  %s1380_s19 = smov 56  }
  0x2c   :  { %s1381_s20 = smov 48   ;;  %s1382_s21 = smov 40  }
  0x2d   :  { %s1383_s24 = smov 16   ;;  %s1384_s25 = smov [#allocation7]  }
  0x2e   :  { %1138 = vmatpush3.bf16.msra.mxu0 %v1260_v2  ;;  %s1067_s26 = sshll.u32 %s1384_s25, 4  ;;  %s1068_s26 = int_to_ptr.vmem [resolvable:$true] %s1067_s26 }
  0x2f   :  { %1149 = vmatprep.subr.bf16.mxu0 %v1371_v0  ;;  %s1337_s27 = scalar_lea.vmem %s1068_s26, 256  ;;  %p1342_p3 = scmp.lt.s32.totalorder %s1068_s26, %s1068_s26 }
  0x30   :  { %p1338_p2 = scmp.ne.s32.totalorder %s1068_s26, %s1337_s27  ;;  %p1343_p4 = scmp.lt.s32.totalorder %s1337_s27, %s1337_s27 }
  0x31   :  { %1140 = vmatmul.mubr.msk.bf16.vlgmr.msra.gmra.mrb[0].mxu0 %vm70_vm1, %v46_v5 }
  0x32   :  { %1151 = vmatprep.mubr.msk.bf16.mxu0 %vm1372_vm0, %v1371_v0  ;;  %p1344_p5 = por %p1343_p4, %p1342_p3 }
  0x34   :  { %p1345_p6 = pnand %p1344_p5, %p1338_p2 }
 0x104   :  { %v108_v7 = vpop.f32.mrb[0].mxu0 }
 0x105   :  { %v109_v8 = vadd.f32 %v1080_v6, %v108_v7  ;;  %v1141_v9 = vpop.f32.mrb[1].mxu0 }
 0x106   :  { %v111_v10 = vpop.f32.mrb[2].mxu0 }
 0x107   :  { %v115_v11 = vmul.f32 0.35355338, %v109_v8  ;;  %v1447_v12 = vpack.c.bf16 %v109_v8, %v109_v8  ;;  %v1142_v13 = vpop.f32.mrb[3].mxu0  ;;  %v112_v15 = vadd.f32 %v1080_v6, %v111_v10 }
 0x109   :  { %v116_v14 = vpack.c.bf16 %v115_v11, %v115_v11  ;;  %119 = vrot.lane.b32.xlu0 %v1447_v12, %s1373_s13  ;;  %v590_v16 = vmul.f32 0.35355338, %v112_v15  ;;  %v1453_v17 = vpack.c.bf16 %v112_v15, %v112_v15 }
 0x10b   :  { %233 = vrot.lane.b32.xlu1 %v116_v14, %s1374_s14  ;;  %v591_v18 = vpack.c.bf16 %v590_v16, %v590_v16 }
 0x10d   :  { %235 = vrot.lane.b32.xlu0 %v1447_v12, %s1375_s15 }
 0x10f   :  { %355 = vrot.lane.b32.xlu1 %v1447_v12, %s1376_s16 }
 0x111   :  { %353 = vrot.lane.b32.xlu0 %v116_v14, %s1377_s2 }
 0x113   :  { %468 = vrot.lane.b32.xlu1 %v1447_v12, %s1378_s17 }
 0x115   :  { %466 = vrot.lane.b32.xlu0 %v116_v14, %s1379_s18 }
 0x117   :  { %594 = vrot.lane.b32.xlu1 %v1453_v17, %s1373_s13 }
 0x119   :  { %708 = vrot.lane.b32.xlu0 %v1453_v17, %s1375_s15 }
 0x11b   :  { %706 = vrot.lane.b32.xlu1 %v591_v18, %s1374_s14 }
 0x11d   :  { %828 = vrot.lane.b32.xlu0 %v1453_v17, %s1376_s16 }
 0x11f   :  { %826 = vrot.lane.b32.xlu1 %v591_v18, %s1377_s2 }
 0x121   :  { %941 = vrot.lane.b32.xlu0 %v1453_v17, %s1378_s17 }
 0x123   :  { %939 = vrot.lane.b32.xlu1 %v591_v18, %s1379_s18 }
 0x17b   :  { %v120_v19 = vpop.permute.xlu0 %119 }
 0x17c   :  { %v126_v20 = vsel %vm121_vm2, %v120_v19, 0 }
 0x17d   :  { %1144 = vmatpush3.bf16.xpose.msra.mxu1 %v126_v20  ;;  %v234_v22 = vpop.permute.xlu1 %233 }
 0x17e   :  { %1155 = vmatprep.subr.bf16.mxu1 %v1371_v0 }
 0x17f   :  { %v236_v21 = vpop.permute.xlu0 %235 }
 0x180   :  { %v241_v23 = vsel %vm121_vm2, %v236_v21, 0 }
 0x181   :  { %v356_v24 = vpop.permute.xlu1 %355 }
 0x182   :  { %v361_v25 = vsel %vm121_vm2, %v356_v24, 0 }
 0x183   :  { %v354_v27 = vpop.permute.xlu0 %353 }
 0x184   :  { %1146 = vmatmul.mubr.msk.bf16.vlgmr.msra.gmra.mrb[0].mxu1 %vm121_vm2, %v116_v14 }
 0x185   :  { %1156 = vmatpush3.bf16.xpose.msra.mxu1 %v241_v23  ;;  %1157 = vmatprep.mubr.msk.bf16.mxu1 %vm1372_vm0, %v1371_v0  ;;  %v469_v26 = vpop.permute.xlu1 %468 }
 0x186   :  { %1167 = vmatprep.subr.bf16.mxu1 %v1371_v0  ;;  %v474_v28 = vsel %vm121_vm2, %v469_v26, 0 }
 0x187   :  { %v467_v30 = vpop.permute.xlu0 %466 }
 0x189   :  { %v595_v29 = vpop.permute.xlu1 %594 }
 0x18a   :  { %v600_v31 = vsel %vm121_vm2, %v595_v29, 0 }
 0x18b   :  { %v709_v32 = vpop.permute.xlu0 %708 }
 0x18c   :  { %1158 = vmatmul.mubr.msk.bf16.vlgmr.msra.gmra.mrb[4].mxu1 %vm121_vm2, %v234_v22  ;;  %v714_v33 = vsel %vm121_vm2, %v709_v32, 0 }
 0x18d   :  { %1168 = vmatpush3.bf16.xpose.msra.mxu1 %v361_v25  ;;  %1169 = vmatprep.mubr.msk.bf16.mxu1 %vm1372_vm0, %v1371_v0  ;;  %v707_v35 = vpop.permute.xlu1 %706 }
 0x18e   :  { %1179 = vmatprep.subr.bf16.mxu1 %v1371_v0 }
 0x18f   :  { %v829_v34 = vpop.permute.xlu0 %828 }
 0x190   :  { %v834_v36 = vsel %vm121_vm2, %v829_v34, 0 }
 0x191   :  { %v827_v38 = vpop.permute.xlu1 %826 }
 0x193   :  { %v942_v37 = vpop.permute.xlu0 %941 }
 0x194   :  { %1170 = vmatmul.mubr.msk.bf16.vlgmr.msra.gmra.mrb[8].mxu1 %vm121_vm2, %v354_v27  ;;  %v947_v39 = vsel %vm121_vm2, %v942_v37, 0 }
 0x195   :  { %1180 = vmatpush3.bf16.xpose.msra.mxu1 %v474_v28  ;;  %1181 = vmatprep.mubr.msk.bf16.mxu1 %vm1372_vm0, %v1371_v0  ;;  %v940_v40 = vpop.permute.xlu1 %939 }
 0x196   :  { %1191 = vmatprep.subr.bf16.mxu1 %v1371_v0 }
 0x19c   :  { %1182 = vmatmul.mubr.msk.bf16.vlgmr.msra.gmra.mrb[12].mxu1 %vm121_vm2, %v467_v30 }
 0x19d   :  { %1192 = vmatpush3.bf16.xpose.msra.mxu1 %v600_v31  ;;  %1193 = vmatprep.mubr.msk.bf16.mxu1 %vm1372_vm0, %v1371_v0 }
 0x19e   :  { %1203 = vmatprep.subr.bf16.mxu1 %v1371_v0 }
 0x1a4   :  { %1194 = vmatmul.mubr.msk.bf16.vlgmr.msra.gmra.mrb[16].mxu1 %vm121_vm2, %v591_v18 }
 0x1a5   :  { %1204 = vmatpush3.bf16.xpose.msra.mxu1 %v714_v33  ;;  %1205 = vmatprep.mubr.msk.bf16.mxu1 %vm1372_vm0, %v1371_v0 }
 0x1a6   :  { %1215 = vmatprep.subr.bf16.mxu1 %v1371_v0 }
 0x1ac   :  { %1206 = vmatmul.mubr.msk.bf16.vlgmr.msra.gmra.mrb[20].mxu1 %vm121_vm2, %v707_v35 }
 0x1ad   :  { %1216 = vmatpush3.bf16.xpose.msra.mxu1 %v834_v36  ;;  %1217 = vmatprep.mubr.msk.bf16.mxu1 %vm1372_vm0, %v1371_v0 }
 0x1ae   :  { %1227 = vmatprep.subr.bf16.mxu1 %v1371_v0 }
 0x1b4   :  { %1218 = vmatmul.mubr.msk.bf16.vlgmr.msra.gmra.mrb[24].mxu1 %vm121_vm2, %v827_v38 }
 0x1b5   :  { %1228 = vmatpush3.bf16.xpose.msra.mxu1 %v947_v39  ;;  %1229 = vmatprep.mubr.msk.bf16.mxu1 %vm1372_vm0, %v1371_v0 }
 0x1bc   :  { %1230 = vmatmul.mubr.msk.bf16.vlgmr.msra.gmra.mrb[28].mxu1 %vm121_vm2, %v940_v40 }
 0x257   :  { %v162_v41 = vpop.f32.mrb[0].mxu1 }
 0x258   :  { %v1147_v42 = vpop.f32.mrb[1].mxu1  ;;  %v168_v43 = vsel %vm121_vm2, %v162_v41, -inf }
 0x259   :  { %v165_v44 = vpop.f32.mrb[2].mxu1  ;;  %169 = vmax.xlane.f32.xlu0 %v168_v43 }
 0x25a   :  { %v1148_v45 = vpop.f32.mrb[3].mxu1 }
 0x25f   :  { %v277_v46 = vpop.f32.mrb[4].mxu1 }
 0x260   :  { %v1159_v47 = vpop.f32.mrb[5].mxu1  ;;  %v283_v48 = vsel %vm121_vm2, %v277_v46, -inf }
 0x261   :  { %v280_v49 = vpop.f32.mrb[6].mxu1  ;;  %284 = vmax.xlane.f32.xlu1 %v283_v48 }
 0x262   :  { %v1160_v50 = vpop.f32.mrb[7].mxu1 }
 0x267   :  { %v397_v51 = vpop.f32.mrb[8].mxu1 }
 0x268   :  { %v1171_v52 = vpop.f32.mrb[9].mxu1  ;;  %v403_v53 = vsel %vm121_vm2, %v397_v51, -inf }
 0x269   :  { %v400_v54 = vpop.f32.mrb[10].mxu1  ;;  %404 = vmax.xlane.f32.xlu0 %v403_v53 }
 0x26a   :  { %v1172_v55 = vpop.f32.mrb[11].mxu1 }
 0x26f   :  { %v1499_v56 = vpop.f32.mrb[12].mxu1 }
 0x270   :  { %v1183_v57 = vpop.f32.mrb[13].mxu1  ;;  %v516_v58 = vsel %vm121_vm2, %v1499_v56, -inf }
 0x271   :  { %v513_v59 = vpop.f32.mrb[14].mxu1  ;;  %517 = vmax.xlane.f32.xlu0 %v516_v58 }
 0x272   :  { %v1184_v60 = vpop.f32.mrb[15].mxu1 }
 0x277   :  { %v1503_v61 = vpop.f32.mrb[16].mxu1 }
 0x278   :  { %v1195_v62 = vpop.f32.mrb[17].mxu1  ;;  %v642_v63 = vsel %vm121_vm2, %v1503_v61, -inf }
 0x279   :  { %643 = vmax.xlane.f32.xlu1 %v642_v63  ;;  %v639_v1 = vpop.f32.mrb[18].mxu1 }
 0x27a   :  { %v1196_v2 = vpop.f32.mrb[19].mxu1 }
 0x27f   :  { %v1507_v3 = vpop.f32.mrb[20].mxu1 }
 0x280   :  { %v1207_v4 = vpop.f32.mrb[21].mxu1  ;;  %v756_v5 = vsel %vm121_vm2, %v1507_v3, -inf }
 0x281   :  { %757 = vmax.xlane.f32.xlu0 %v756_v5  ;;  %v753_v6 = vpop.f32.mrb[22].mxu1 }
 0x282   :  { %v1208_v7 = vpop.f32.mrb[23].mxu1 }
 0x287   :  { %v870_v8 = vpop.f32.mrb[24].mxu1 }
 0x288   :  { %v1219_v9 = vpop.f32.mrb[25].mxu1  ;;  %v876_v10 = vsel %vm121_vm2, %v870_v8, -inf }
 0x289   :  { %877 = vmax.xlane.f32.xlu1 %v876_v10  ;;  %v873_v11 = vpop.f32.mrb[26].mxu1 }
 0x28a   :  { %v1220_v13 = vpop.f32.mrb[27].mxu1 }
 0x28f   :  { %v1512_v14 = vpop.f32.mrb[28].mxu1 }
 0x290   :  { %v1231_v15 = vpop.f32.mrb[29].mxu1  ;;  %v989_v19 = vsel %vm121_vm2, %v1512_v14, -inf }
 0x291   :  { %v986_v16 = vpop.f32.mrb[30].mxu1 }
 0x292   :  { %v1232_v18 = vpop.f32.mrb[31].mxu1 }
 0x297   :  { %298 = vrot.lane.b32.xlu0 %v1447_v12, %s1380_s19 }
 0x29a   :  { %183 = vrot.lane.b32.xlu1 %v1447_v12, %s1369_s0 }
 0x2b6   :  { %990 = vmax.xlane.f32.xlu0 %v989_v19 }
 0x2e6   :  { %v170_v20 = vpop.xlane.xlu0 %169 }
 0x2e7   :  { %v171_v21 = vsub.f32 %v162_v41, %v170_v20 }
 0x2e9   :  { %v172_v22 = vpack.c.bf16 %v171_v21, %v171_v21 }
 0x2eb   :  { %v174_v23 = vmul.bf16 1069105081, %v172_v22 }
 0x2ed   :  { %1261 = vpow.bf16 %v174_v23 }
 0x2ee   :  { %v285_v24 = vpop.xlane.xlu1 %284 }
 0x2ef   :  { %v286_v25 = vsub.f32 %v277_v46, %v285_v24 }
 0x2f1   :  { %v287_v26 = vpack.c.bf16 %v286_v25, %v286_v25 }
 0x2f3   :  { %v289_v27 = vmul.bf16 1069105081, %v287_v26 }
 0x2f5   :  { %1263 = vpow.bf16 %v289_v27 }
 0x2f6   :  { %v405_v28 = vpop.xlane.xlu0 %404 }
 0x2f7   :  { %v406_v29 = vsub.f32 %v397_v51, %v405_v28 }
 0x2f8   :  { %v1520_v30 = vpop.eup %1261 }
 0x2f9   :  { %v407_v31 = vpack.c.bf16 %v406_v29, %v406_v29  ;;  %v176_v32 = vunpack.c.l.bf16 %v1520_v30 }
 0x2fb   :  { %v409_v33 = vmul.bf16 1069105081, %v407_v31  ;;  %v177_v34 = vsel %vm121_vm2, %v176_v32, 0.0 }
 0x2fc   :  { %178 = vadd.xlane.f32.xlu1 %v177_v34 }
 0x2fd   :  { %1265 = vpow.bf16 %v409_v33 }
 0x2fe   :  { %v518_v43 = vpop.xlane.xlu0 %517 }
 0x2ff   :  { %v519_v44 = vsub.f32 %v1499_v56, %v518_v43 }
 0x300   :  { %v1526_v35 = vpop.eup %1263 }
 0x301   :  { %v291_v36 = vunpack.c.l.bf16 %v1526_v35  ;;  %v520_v47 = vpack.c.bf16 %v519_v44, %v519_v44 }
 0x303   :  { %v292_v37 = vsel %vm121_vm2, %v291_v36, 0.0  ;;  %v522_v51 = vmul.bf16 1069105081, %v520_v47 }
 0x304   :  { %293 = vadd.xlane.f32.xlu0 %v292_v37 }
 0x305   :  { %1267 = vpow.bf16 %v522_v51 }
 0x306   :  { %v644_v41 = vpop.xlane.xlu1 %643 }
 0x307   :  { %v645_v48 = vsub.f32 %v1503_v61, %v644_v41 }
 0x308   :  { %v1532_v38 = vpop.eup %1265 }
 0x309   :  { %v411_v39 = vunpack.c.l.bf16 %v1532_v38  ;;  %v646_v52 = vpack.c.bf16 %v645_v48, %v645_v48 }
 0x30b   :  { %v412_v40 = vsel %vm121_vm2, %v411_v39, 0.0  ;;  %v648_v55 = vmul.bf16 1069105081, %v646_v52 }
 0x30c   :  { %413 = vadd.xlane.f32.xlu1 %v412_v40 }
 0x30d   :  { %1269 = vpow.bf16 %v648_v55 }
 0x30e   :  { %v758_v49 = vpop.xlane.xlu0 %757 }
 0x30f   :  { %v759_v50 = vsub.f32 %v1507_v3, %v758_v49 }
 0x311   :  { %v760_v54 = vpack.c.bf16 %v759_v50, %v759_v50 }
 0x312   :  { %v299_v5 = vpop.permute.xlu0 %298 }
 0x313   :  { %v762_v57 = vmul.bf16 1069105081, %v760_v54  ;;  %v304_v22 = vsel %vm188_vm3, %v299_v5, 0 }
 0x315   :  { %1271 = vpow.bf16 %v762_v57 }
 0x316   :  { %v878_v42 = vpop.xlane.xlu1 %877 }
 0x317   :  { %v879_v53 = vsub.f32 %v870_v8, %v878_v42 }
 0x319   :  { %v880_v56 = vpack.c.bf16 %v879_v53, %v879_v53 }
 0x31a   :  { %v184_v45 = vpop.permute.xlu1 %183  ;;  %418 = vrot.lane.b32.xlu0 %v1447_v12, %s1381_s20 }
 0x31b   :  { %v190_v46 = vsel %vm188_vm3, %v184_v45, 0  ;;  %v882_v58 = vmul.bf16 1069105081, %v880_v56 }
 0x31c   :  { %1150 = vmatpush3.bf16.msra.mxu0 %v190_v46 }
 0x31d   :  { %531 = vrot.lane.b32.xlu1 %v1447_v12, %s1382_s21  ;;  %1161 = vmatprep.subr.bf16.mxu0 %v1371_v0  ;;  %1273 = vpow.bf16 %v882_v58  ;;  %v1547_v12 = vpop.eup %1267 }
 0x31e   :  { %v524_v59 = vunpack.c.l.bf16 %v1547_v12  ;;  %v1550_v60 = vpop.eup %1269 }
 0x31f   :  { %v650_v63 = vunpack.c.l.bf16 %v1550_v60 }
 0x320   :  { %v1552_v61 = vpop.eup %1271  ;;  %v525_v62 = vsel %vm121_vm2, %v524_v59, 0.0 }
 0x321   :  { %v651_v2 = vsel %vm121_vm2, %v650_v63, 0.0  ;;  %v764_v3 = vunpack.c.l.bf16 %v1552_v61 }
 0x323   :  { %v765_v6 = vsel %vm121_vm2, %v764_v3, 0.0 }
 0x328   :  { %v1558_v1 = vpop.eup %1273 }
 0x329   :  { %v884_v4 = vunpack.c.l.bf16 %v1558_v1 }
 0x32b   :  { %v885_v7 = vsel %vm121_vm2, %v884_v4, 0.0 }
 0x339   :  { %526 = vadd.xlane.f32.xlu0 %v525_v62 }
 0x33d   :  { %652 = vadd.xlane.f32.xlu0 %v651_v2 }
 0x341   :  { %766 = vadd.xlane.f32.xlu1 %v765_v6  ;;  %886 = vadd.xlane.f32.xlu0 %v885_v7 }
 0x343   :  { %v991_v8 = vpop.xlane.xlu0 %990 }
 0x344   :  { %v992_v9 = vsub.f32 %v1512_v14, %v991_v8 }
 0x346   :  { %v993_v10 = vpack.c.bf16 %v992_v9, %v992_v9 }
 0x348   :  { %v995_v11 = vmul.bf16 1069105081, %v993_v10 }
 0x34a   :  { %1275 = vpow.bf16 %v995_v11 }
 0x352   :  { %771 = vrot.lane.b32.xlu1 %v1453_v17, %s1380_s19 }
 0x355   :  { %v1574_v13 = vpop.eup %1275 }
 0x356   :  { %891 = vrot.lane.b32.xlu1 %v1453_v17, %s1381_s20  ;;  %v997_v15 = vunpack.c.l.bf16 %v1574_v13 }
 0x358   :  { %v998_v16 = vsel %vm121_vm2, %v997_v15, 0.0 }
 0x359   :  { %999 = vadd.xlane.f32.xlu0 %v998_v16 }
 0x35a   :  { %1004 = vrot.lane.b32.xlu1 %v1453_v17, %s1382_s21 }
 0x36f   :  { %657 = vrot.lane.b32.xlu0 %v1453_v17, %s1369_s0 }
 0x389   :  { %v179_v14 = vpop.xlane.xlu1 %178 }
 0x38a   :  { %1277 = vrcp.f32 %v179_v14 }
 0x391   :  { %v294_v18 = vpop.xlane.xlu0 %293 }
 0x392   :  { %1279 = vrcp.f32 %v294_v18 }
 0x394   :  { %v1278_v19 = vpop.eup %1277 }
 0x395   :  { %v181_v20 = vmul.f32 %v1278_v19, %v176_v32  ;;  %v419_v25 = vpop.permute.xlu0 %418 }
 0x396   :  { %v424_v27 = vsel %vm188_vm3, %v419_v25, 0 }
 0x397   :  { %v182_v21 = vpack.c.bf16 %v181_v20, %v181_v20 }
 0x399   :  { %1152 = vmatmul.mubr.msk.bf16.vlgmr.msra.gmra.mrb[4].mxu0 %vm121_vm2, %v182_v21  ;;  %v414_v23 = vpop.xlane.xlu1 %413 }
 0x39a   :  { %1162 = vmatpush3.bf16.msra.mxu0 %v304_v22  ;;  %1281 = vrcp.f32 %v414_v23  ;;  %1163 = vmatprep.mubr.msk.bf16.mxu0 %vm1372_vm0, %v1371_v0 }
 0x39b   :  { %1173 = vmatprep.subr.bf16.mxu0 %v1371_v0 }
 0x39c   :  { %v1280_v17 = vpop.eup %1279 }
 0x39d   :  { %v296_v24 = vmul.f32 %v1280_v17, %v291_v36  ;;  %v532_v30 = vpop.permute.xlu1 %531 }
 0x39e   :  { %v537_v32 = vsel %vm188_vm3, %v532_v30, 0 }
 0x39f   :  { %v297_v26 = vpack.c.bf16 %v296_v24, %v296_v24 }
 0x3a1   :  { %1164 = vmatmul.mubr.msk.bf16.vlgmr.msra.gmra.mrb[8].mxu0 %vm121_vm2, %v297_v26 }
 0x3a2   :  { %1174 = vmatpush3.bf16.msra.mxu0 %v424_v27  ;;  %1175 = vmatprep.mubr.msk.bf16.mxu0 %vm1372_vm0, %v1371_v0 }
 0x3a3   :  { %1185 = vmatprep.subr.bf16.mxu0 %v1371_v0 }
 0x3a4   :  { %v1282_v28 = vpop.eup %1281 }
 0x3a5   :  { %v416_v29 = vmul.f32 %v1282_v28, %v411_v39 }
 0x3a7   :  { %v417_v31 = vpack.c.bf16 %v416_v29, %v416_v29 }
 0x3a9   :  { %1176 = vmatmul.mubr.msk.bf16.vlgmr.msra.gmra.mrb[12].mxu0 %vm121_vm2, %v417_v31 }
 0x3aa   :  { %1186 = vmatpush3.bf16.msra.mxu0 %v537_v32  ;;  %1187 = vmatprep.mubr.msk.bf16.mxu0 %vm1372_vm0, %v1371_v0 }
 0x3ab   :  { %1197 = vmatprep.subr.bf16.mxu0 %v1371_v0 }
 0x3c6   :  { %v527_v33 = vpop.xlane.xlu0 %526 }
 0x3c7   :  { %1283 = vrcp.f32 %v527_v33 }
 0x3ca   :  { %v653_v37 = vpop.xlane.xlu0 %652 }
 0x3cb   :  { %1285 = vrcp.f32 %v653_v37 }
 0x3ce   :  { %v767_v38 = vpop.xlane.xlu1 %766  ;;  %v887_v39 = vpop.xlane.xlu0 %886 }
 0x3cf   :  { %1287 = vrcp.f32 %v767_v38 }
 0x3d0   :  { %1289 = vrcp.f32 %v887_v39 }
 0x3d1   :  { %v1284_v34 = vpop.eup %1283 }
 0x3d2   :  { %v529_v35 = vmul.f32 %v1284_v34, %v524_v59  ;;  %v772_v45 = vpop.permute.xlu1 %771 }
 0x3d3   :  { %v777_v48 = vsel %vm188_vm3, %v772_v45, 0 }
 0x3d4   :  { %v530_v36 = vpack.c.bf16 %v529_v35, %v529_v35 }
 0x3d5   :  { %v1286_v40 = vpop.eup %1285 }
 0x3d6   :  { %1188 = vmatmul.mubr.msk.bf16.vlgmr.msra.gmra.mrb[16].mxu0 %vm121_vm2, %v530_v36  ;;  %v655_v42 = vmul.f32 %v1286_v40, %v650_v63  ;;  %v892_v50 = vpop.permute.xlu1 %891 }
 0x3d7   :  { %1199 = vmatprep.mubr.msk.bf16.mxu0 %vm1372_vm0, %v1371_v0  ;;  %v897_v53 = vsel %vm188_vm3, %v892_v50, 0 }
 0x3d8   :  { %v656_v46 = vpack.c.bf16 %v655_v42, %v655_v42 }
 0x3d9   :  { %v1288_v47 = vpop.eup %1287 }
 0x3da   :  { %v769_v49 = vmul.f32 %v1288_v47, %v764_v3  ;;  %v1290_v52 = vpop.eup %1289  ;;  %v1005_v55 = vpop.permute.xlu1 %1004 }
 0x3db   :  { %v889_v54 = vmul.f32 %v1290_v52, %v884_v4  ;;  %v1010_v58 = vsel %vm188_vm3, %v1005_v55, 0 }
 0x3dc   :  { %v770_v51 = vpack.c.bf16 %v769_v49, %v769_v49 }
 0x3dd   :  { %v890_v56 = vpack.c.bf16 %v889_v54, %v889_v54 }
 0x3e6   :  { %v1000_v41 = vpop.xlane.xlu0 %999 }
 0x3e7   :  { %1291 = vrcp.f32 %v1000_v41 }
 0x3ea   :  { %v658_v43 = vpop.permute.xlu0 %657 }
 0x3eb   :  { %v663_v44 = vsel %vm188_vm3, %v658_v43, 0 }
 0x3ec   :  { %1198 = vmatpush3.bf16.msra.mxu0 %v663_v44 }
 0x3ed   :  { %1209 = vmatprep.subr.bf16.mxu0 %v1371_v0 }
 0x3ef   :  { %1200 = vmatmul.mubr.msk.bf16.vlgmr.msra.gmra.mrb[20].mxu0 %vm121_vm2, %v656_v46 }
 0x3f0   :  { %1210 = vmatpush3.bf16.msra.mxu0 %v777_v48  ;;  %1211 = vmatprep.mubr.msk.bf16.mxu0 %vm1372_vm0, %v1371_v0 }
 0x3f1   :  { %1221 = vmatprep.subr.bf16.mxu0 %v1371_v0  ;;  %v1292_v57 = vpop.eup %1291 }
 0x3f2   :  { %v1002_v12 = vmul.f32 %v1292_v57, %v997_v15 }
 0x3f4   :  { %v1003_v59 = vpack.c.bf16 %v1002_v12, %v1002_v12 }
 0x3f7   :  { %1212 = vmatmul.mubr.msk.bf16.vlgmr.msra.gmra.mrb[24].mxu0 %vm121_vm2, %v770_v51 }
 0x3f8   :  { %1222 = vmatpush3.bf16.msra.mxu0 %v897_v53  ;;  %1223 = vmatprep.mubr.msk.bf16.mxu0 %vm1372_vm0, %v1371_v0 }
 0x3f9   :  { %1233 = vmatprep.subr.bf16.mxu0 %v1371_v0 }
 0x3ff   :  { %1224 = vmatmul.mubr.msk.bf16.vlgmr.msra.gmra.mrb[28].mxu0 %vm121_vm2, %v890_v56 }
 0x400   :  { %1234 = vmatpush3.bf16.msra.mxu0 %v1010_v58  ;;  %1235 = vmatprep.mubr.msk.bf16.mxu0 %vm1372_vm0, %v1371_v0 }
 0x407   :  { %1236 = vmatmul.mubr.msk.bf16.vlgmr.msra.gmra.mrb[32].mxu0 %vm121_vm2, %v1003_v59 }
 0x46c   :  { %v226_v60 = vpop.f32.mrb[4].mxu0 }
 0x46d   :  { %v1153_v61 = vpop.f32.mrb[5].mxu0 }
 0x46e   :  { %v229_v62 = vpop.f32.mrb[6].mxu0 }
 0x46f   :  { %v1154_v63 = vpop.f32.mrb[7].mxu0 }
 0x474   :  { %v340_v1 = vpop.f32.mrb[8].mxu0 }
 0x475   :  { %347 = vrot.lane.b32.xlu0 %v340_v1, %s1367_s23  ;;  %v1165_v2 = vpop.f32.mrb[9].mxu0 }
 0x476   :  { %v343_v3 = vpop.f32.mrb[10].mxu0 }
 0x477   :  { %v1166_v4 = vpop.f32.mrb[11].mxu0 }
 0x47c   :  { %v460_v5 = vpop.f32.mrb[12].mxu0 }
 0x47d   :  { %v1177_v6 = vpop.f32.mrb[13].mxu0 }
 0x47e   :  { %v463_v7 = vpop.f32.mrb[14].mxu0 }
 0x47f   :  { %v1178_v0 = vpop.f32.mrb[15].mxu0 }
 0x4a9   :  { %v573_v8 = vpop.f32.mrb[16].mxu0 }
 0x4aa   :  { %580 = vrot.lane.b32.xlu1 %v573_v8, %s1367_s23  ;;  %v1189_v9 = vpop.f32.mrb[17].mxu0 }
 0x4ab   :  { %v576_v10 = vpop.f32.mrb[18].mxu0 }
 0x4ac   :  { %v1190_v11 = vpop.f32.mrb[19].mxu0 }
 0x4c2   :  { %v699_v13 = vpop.f32.mrb[20].mxu0 }
 0x4c3   :  { %v1201_v15 = vpop.f32.mrb[21].mxu0 }
 0x4c4   :  { %v702_v16 = vpop.f32.mrb[22].mxu0 }
 0x4c5   :  { %v1202_v14 = vpop.f32.mrb[23].mxu0 }
 0x4ca   :  { %v813_v18 = vpop.f32.mrb[24].mxu0 }
 0x4cb   :  { %820 = vrot.lane.b32.xlu0 %v813_v18, %s1367_s23  ;;  %v1213_v19 = vpop.f32.mrb[25].mxu0 }
 0x4cc   :  { %v816_v20 = vpop.f32.mrb[26].mxu0 }
 0x4cd   :  { %v1214_v21 = vpop.f32.mrb[27].mxu0 }
 0x4d2   :  { %v933_v22 = vpop.f32.mrb[28].mxu0 }
 0x4d3   :  { %v1225_v23 = vpop.f32.mrb[29].mxu0 }
 0x4d4   :  { %v936_v17 = vpop.f32.mrb[30].mxu0 }
 0x4d5   :  { %v1226_v24 = vpop.f32.mrb[31].mxu0 }
 0x4da   :  { %v1046_v25 = vpop.f32.mrb[32].mxu0 }
 0x4db   :  { %1053 = vrot.lane.b32.xlu1 %v1046_v25, %s1367_s23  ;;  %v1237_v26 = vpop.f32.mrb[33].mxu0 }
 0x4dc   :  { %v1049_v27 = vpop.f32.mrb[34].mxu0 }
 0x4dd   :  { %v1238_v28 = vpop.f32.mrb[35].mxu0 }
 0x4e7   :  { %v348_v29 = vpop.permute.xlu0 %347 }
 0x4e8   :  { %v350_v30 = vsel %vm121_vm2, %v226_v60, %v348_v29 }
 0x4e9   :  { %352 = vst.msk [vmem:[#allocation7] sm:$0xff] %vm351_vm4, %v350_v30 }
 0x51c   :  { %v581_v31 = vpop.permute.xlu1 %580 }
 0x51d   :  { %v583_v32 = vsel %vm121_vm2, %v460_v5, %v581_v31 }
 0x51e   :  { %585 = vrot.lane.b32.xlu1 %v583_v32, %s1383_s24 }
 0x53d   :  { %v821_v33 = vpop.permute.xlu0 %820 }
 0x53e   :  { %v823_v34 = vsel %vm121_vm2, %v699_v13, %v821_v33 }
 0x53f   :  { %825 = vst.msk [vmem:[#allocation7 + $0x8] sm:$0xff] %vm351_vm4, %v823_v34 }
 0x54d   :  { %v1054_v35 = vpop.permute.xlu1 %1053 }
 0x54e   :  { %v1056_v36 = vsel %vm121_vm2, %v933_v22, %v1054_v35 }
 0x54f   :  { %1058 = vrot.lane.b32.xlu1 %v1056_v36, %s1383_s24 }
 0x590   :  { %v586_v37 = vpop.permute.xlu1 %585 }
 0x591   :  { %589 = vst.msk [vmem:[#allocation7] sm:$0xff] %vm588_vm5, %v586_v37 }
 0x5c1   :  { %v1059_v38 = vpop.permute.xlu1 %1058 }
 0x5c2   :  { %1061 = vst.msk [vmem:[#allocation7 + $0x8] sm:$0xff] %vm588_vm5, %v1059_v38 }
 0x5c3   :  { %1348 = shalt.err (!%p1345_p6)
}
 0x5c4   :  { %s1349_s30 = scalar_lea.hbm %s1663_s3, 256 }
 0x5c5   :  { %p1350_p7 = scmp.ne.s32.totalorder %s1663_s3, %s1349_s30  ;;  %p1353_p8 = scmp.lt.u32.totalorder %s1349_s30, %s1663_s3 }
 0x5c7   :  { %p1355_p9 = pnand %p1353_p8, %p1350_p7 }
 0x5c9   :  { %1358 = shalt.err (!%p1355_p9)
}
 0x5ca   :  { %1073 = dma.vmem_to_hbm [thread:$0]  %s1068_s26, 256, %s1663_s3, [#allocation4], %s1366_s22, %s1366_s22, %s1367_s23  }
 0x5cb   :  { %1363 = dma.done.wait [#allocation4], 256  }
 0x5cc   :  { %1364 = vsyncadd [#allocation4], 4294967040 }
 0x5cd   :  { %1077 = vsyncpa [#allocation3], 1 }
 0x5ce   :  { %1078 = vsyncpa [#allocation6], 1 }
 0x5cf   :  { %1079 = vsyncpa [#allocation4], 1 }

// kernel: tpu_custom_call.1
= control target key start
LH: loop header
LB: loop body
LE: loop exit
PB: predicated region body
PF: predicated region fallthrough
CT: control target
= control target key end

     0   :  { %8 = vsyncpa [#allocation3], 0  ;;  %s1660_s0 = inlined_call_operand.hbm [shape: f32[2,8,32], index: 0, kind: input, shape index: {}]   ;;  %s1661_s1 = inlined_call_operand.hbm [shape: bf16[32,96], index: 1, kind: input, shape index: {}]   ;;  %s1662_s2 = inlined_call_operand.vmem [shape: f32[1,96], index: 2, kind: input, shape index: {}]   ;;  %s1663_s3 = inlined_call_operand.hbm [shape: f32[2,8,32], index: 3, kind: output, shape index: {}]  }
   0x1   :  { %9 = vsyncpa [#allocation6], 0 }
   0x2   :  { %10 = vsyncpa [#allocation4], 0  ;;  %s1365_s12 = smov [#allocation2]   ;;  %s1293_s16 = scalar_lea.hbm %s1660_s0, 256 }
   0x3   :  { %s16_s13 = sshll.u32 %s1365_s12, 4  ;;  %p1294_p0 = scmp.ne.s32.totalorder %s1660_s0, %s1293_s16  ;;  %s17_s13 = int_to_ptr.vmem [resolvable:$true] %s16_s13 }
   0x4   :  { %p1297_p1 = scmp.lt.u32.totalorder %s1293_s16, %s1660_s0 }
   0x6   :  { %p1299_p2 = pnand %p1297_p1, %p1294_p0 }
   0x8   :  { %1302 = shalt.err (!%p1299_p2)
}
   0x9   :  { %s1303_s21 = scalar_lea.vmem %s17_s13, 256  ;;  %p1308_p4 = scmp.lt.s32.totalorder %s17_s13, %s17_s13 }
   0xa   :  { %p1304_p3 = scmp.ne.s32.totalorder %s17_s13, %s1303_s21  ;;  %p1309_p5 = scmp.lt.s32.totalorder %s1303_s21, %s1303_s21 }
   0xc   :  { %p1310_p6 = por %p1309_p5, %p1308_p4 }
   0xe   :  { %p1311_p7 = pnand %p1310_p6, %p1304_p3 }
  0x10   :  { %1314 = shalt.err (!%p1311_p7)
}
  0x11   :  { %s1366_s22 = smov 128   ;;  %s1367_s23 = smov 8  }
  0x12   :  { %22 = dma.hbm_to_vmem [thread:$0]  %s1660_s0, 256, %s17_s13, [#allocation3], %s1366_s22, %s1366_s22, %s1367_s23  }
  0x13   :  { %s1368_s26 = smov [#allocation5]   ;;  %s1315_s30 = scalar_lea.hbm %s1661_s1, 256 }
  0x14   :  { %s28_s27 = sshll.u32 %s1368_s26, 4  ;;  %p1316_p8 = scmp.ne.s32.totalorder %s1661_s1, %s1315_s30  ;;  %s29_s27 = int_to_ptr.vmem [resolvable:$true] %s28_s27 }
  0x15   :  { %p1319_p9 = scmp.lt.u32.totalorder %s1315_s30, %s1661_s1 }
  0x17   :  { %p1321_p10 = pnand %p1319_p9, %p1316_p8 }
  0x19   :  { %1324 = shalt.err (!%p1321_p10)
}
  0x1a   :  { %s1325_s8 = scalar_lea.vmem %s29_s27, 256  ;;  %p1330_p12 = scmp.lt.s32.totalorder %s29_s27, %s29_s27 }
  0x1b   :  { %p1326_p11 = scmp.ne.s32.totalorder %s29_s27, %s1325_s8  ;;  %p1331_p13 = scmp.lt.s32.totalorder %s1325_s8, %s1325_s8 }
  0x1d   :  { %p1332_p0 = por %p1331_p13, %p1330_p12 }
  0x1f   :  { %p1333_p1 = pnand %p1332_p0, %p1326_p11 }
  0x21   :  { %1336 = shalt.err (!%p1333_p1)
}
  0x22   :  { %s1369_s0 = smov 64   ;;  %s1370_s9 = smov 4  }
  0x23   :  { %34 = dma.hbm_to_vmem [thread:$0]  %s1661_s1, 256, %s29_s27, [#allocation6], %s1369_s0, %s1369_s0, %s1370_s9  }
  0x24   :  { %1359 = dma.done.wait [#allocation3], 256  }
  0x25   :  { %1360 = vsyncadd [#allocation3], 4294967040 }
  0x26   :  { %1361 = dma.done.wait [#allocation6], 256  }
  0x27   :  { %1362 = vsyncadd [#allocation6], 4294967040  ;;  %v1371_v0 = vmov 0.0   ;;  %vm1372_vm0 = vmmov 0   ;;  %v1259_v1 = vld [vmem:[#allocation5] sm:$0xff]   ;;  %v1260_v2 = vld [vmem:[#allocation5 + $0x8] sm:$0xff]  }
  0x28   :  { %1135 = vmatprep.subr.bf16.mxu0 %v1371_v0  ;;  %1139 = vmatprep.mubr.msk.bf16.mxu0 %vm1372_vm0, %v1371_v0  ;;  %v44_v3 = vld [vmem:[#allocation2] sm:$0xff]  ;;  %v45_v4 = vld [vmem:[#allocation2 + $0x8] sm:$0xff]  ;;  %vm70_vm1 = vcmask 261120   ;;  %s1373_s13 = smov 96   ;;  %s1374_s14 = smov 120   ;;  %vm121_vm2 = vcmask 64512  }
  0x29   :  { %1143 = vmatprep.subr.bf16.mxu1 %v1371_v0  ;;  %1145 = vmatprep.mubr.msk.bf16.mxu1 %vm1372_vm0, %v1371_v0  ;;  %v46_v5 = vpack.c.bf16 %v45_v4, %v44_v3  ;;  %v1080_v6 = vld [vmem:[%s1662_s2] ss:$0 sm:$0xff]  ;;  %s1375_s15 = smov 88   ;;  %s1376_s16 = smov 80   ;;  %vm188_vm3 = vcmask 1043456   ;;  %vm351_vm4 = vcmask 130048  }
  0x2a   :  { %1136 = vmatpush3.bf16.msra.mxu0 %v1259_v1  ;;  %s1377_s2 = smov 112   ;;  %s1378_s17 = smov 72   ;;  %vm588_vm5 = vcmask 261248  }
  0x2b   :  { %1137 = vmatprep.subr.bf16.mxu0 %v1371_v0  ;;  %s1379_s18 = smov 104   ;;  %s1380_s19 = smov 56  }
  0x2c   :  { %s1381_s20 = smov 48   ;;  %s1382_s21 = smov 40  }
  0x2d   :  { %s1383_s24 = smov 16   ;;  %s1384_s25 = smov [#allocation7]  }
  0x2e   :  { %1138 = vmatpush3.bf16.msra.mxu0 %v1260_v2  ;;  %s1067_s26 = sshll.u32 %s1384_s25, 4  ;;  %s1068_s26 = int_to_ptr.vmem [resolvable:$true] %s1067_s26 }
  0x2f   :  { %1149 = vmatprep.subr.bf16.mxu0 %v1371_v0  ;;  %s1337_s27 = scalar_lea.vmem %s1068_s26, 256  ;;  %p1342_p3 = scmp.lt.s32.totalorder %s1068_s26, %s1068_s26 }
  0x30   :  { %p1338_p2 = scmp.ne.s32.totalorder %s1068_s26, %s1337_s27  ;;  %p1343_p4 = scmp.lt.s32.totalorder %s1337_s27, %s1337_s27 }
  0x31   :  { %1140 = vmatmul.mubr.msk.bf16.vlgmr.msra.gmra.mrb[0].mxu0 %vm70_vm1, %v46_v5 }
  0x32   :  { %1151 = vmatprep.mubr.msk.bf16.mxu0 %vm1372_vm0, %v1371_v0  ;;  %p1344_p5 = por %p1343_p4, %p1342_p3 }
  0x34   :  { %p1345_p6 = pnand %p1344_p5, %p1338_p2 }
 0x104   :  { %v108_v7 = vpop.f32.mrb[0].mxu0 }
 0x105   :  { %v109_v8 = vadd.f32 %v1080_v6, %v108_v7  ;;  %v1141_v9 = vpop.f32.mrb[1].mxu0 }
 0x106   :  { %v111_v10 = vpop.f32.mrb[2].mxu0 }
 0x107   :  { %v115_v11 = vmul.f32 0.35355338, %v109_v8  ;;  %v1447_v12 = vpack.c.bf16 %v109_v8, %v109_v8  ;;  %v1142_v13 = vpop.f32.mrb[3].mxu0  ;;  %v112_v15 = vadd.f32 %v1080_v6, %v111_v10 }
 0x109   :  { %v116_v14 = vpack.c.bf16 %v115_v11, %v115_v11  ;;  %119 = vrot.lane.b32.xlu0 %v1447_v12, %s1373_s13  ;;  %v590_v16 = vmul.f32 0.35355338, %v112_v15  ;;  %v1453_v17 = vpack.c.bf16 %v112_v15, %v112_v15 }
 0x10b   :  { %233 = vrot.lane.b32.xlu1 %v116_v14, %s1374_s14  ;;  %v591_v18 = vpack.c.bf16 %v590_v16, %v590_v16 }
 0x10d   :  { %235 = vrot.lane.b32.xlu0 %v1447_v12, %s1375_s15 }
 0x10f   :  { %355 = vrot.lane.b32.xlu1 %v1447_v12, %s1376_s16 }
 0x111   :  { %353 = vrot.lane.b32.xlu0 %v116_v14, %s1377_s2 }
 0x113   :  { %468 = vrot.lane.b32.xlu1 %v1447_v12, %s1378_s17 }
 0x115   :  { %466 = vrot.lane.b32.xlu0 %v116_v14, %s1379_s18 }
 0x117   :  { %594 = vrot.lane.b32.xlu1 %v1453_v17, %s1373_s13 }
 0x119   :  { %708 = vrot.lane.b32.xlu0 %v1453_v17, %s1375_s15 }
 0x11b   :  { %706 = vrot.lane.b32.xlu1 %v591_v18, %s1374_s14 }
 0x11d   :  { %828 = vrot.lane.b32.xlu0 %v1453_v17, %s1376_s16 }
 0x11f   :  { %826 = vrot.lane.b32.xlu1 %v591_v18, %s1377_s2 }
 0x121   :  { %941 = vrot.lane.b32.xlu0 %v1453_v17, %s1378_s17 }
 0x123   :  { %939 = vrot.lane.b32.xlu1 %v591_v18, %s1379_s18 }
 0x17b   :  { %v120_v19 = vpop.permute.xlu0 %119 }
 0x17c   :  { %v126_v20 = vsel %vm121_vm2, %v120_v19, 0 }
 0x17d   :  { %1144 = vmatpush3.bf16.xpose.msra.mxu1 %v126_v20  ;;  %v234_v22 = vpop.permute.xlu1 %233 }
 0x17e   :  { %1155 = vmatprep.subr.bf16.mxu1 %v1371_v0 }
 0x17f   :  { %v236_v21 = vpop.permute.xlu0 %235 }
 0x180   :  { %v241_v23 = vsel %vm121_vm2, %v236_v21, 0 }
 0x181   :  { %v356_v24 = vpop.permute.xlu1 %355 }
 0x182   :  { %v361_v25 = vsel %vm121_vm2, %v356_v24, 0 }
 0x183   :  { %v354_v27 = vpop.permute.xlu0 %353 }
 0x184   :  { %1146 = vmatmul.mubr.msk.bf16.vlgmr.msra.gmra.mrb[0].mxu1 %vm121_vm2, %v116_v14 }
 0x185   :  { %1156 = vmatpush3.bf16.xpose.msra.mxu1 %v241_v23  ;;  %1157 = vmatprep.mubr.msk.bf16.mxu1 %vm1372_vm0, %v1371_v0  ;;  %v469_v26 = vpop.permute.xlu1 %468 }
 0x186   :  { %1167 = vmatprep.subr.bf16.mxu1 %v1371_v0  ;;  %v474_v28 = vsel %vm121_vm2, %v469_v26, 0 }
 0x187   :  { %v467_v30 = vpop.permute.xlu0 %466 }
 0x189   :  { %v595_v29 = vpop.permute.xlu1 %594 }
 0x18a   :  { %v600_v31 = vsel %vm121_vm2, %v595_v29, 0 }
 0x18b   :  { %v709_v32 = vpop.permute.xlu0 %708 }
 0x18c   :  { %1158 = vmatmul.mubr.msk.bf16.vlgmr.msra.gmra.mrb[4].mxu1 %vm121_vm2, %v234_v22  ;;  %v714_v33 = vsel %vm121_vm2, %v709_v32, 0 }
 0x18d   :  { %1168 = vmatpush3.bf16.xpose.msra.mxu1 %v361_v25  ;;  %1169 = vmatprep.mubr.msk.bf16.mxu1 %vm1372_vm0, %v1371_v0  ;;  %v707_v35 = vpop.permute.xlu1 %706 }
 0x18e   :  { %1179 = vmatprep.subr.bf16.mxu1 %v1371_v0 }
 0x18f   :  { %v829_v34 = vpop.permute.xlu0 %828 }
 0x190   :  { %v834_v36 = vsel %vm121_vm2, %v829_v34, 0 }
 0x191   :  { %v827_v38 = vpop.permute.xlu1 %826 }
 0x193   :  { %v942_v37 = vpop.permute.xlu0 %941 }
 0x194   :  { %1170 = vmatmul.mubr.msk.bf16.vlgmr.msra.gmra.mrb[8].mxu1 %vm121_vm2, %v354_v27  ;;  %v947_v39 = vsel %vm121_vm2, %v942_v37, 0 }
 0x195   :  { %1180 = vmatpush3.bf16.xpose.msra.mxu1 %v474_v28  ;;  %1181 = vmatprep.mubr.msk.bf16.mxu1 %vm1372_vm0, %v1371_v0  ;;  %v940_v40 = vpop.permute.xlu1 %939 }
 0x196   :  { %1191 = vmatprep.subr.bf16.mxu1 %v1371_v0 }
 0x19c   :  { %1182 = vmatmul.mubr.msk.bf16.vlgmr.msra.gmra.mrb[12].mxu1 %vm121_vm2, %v467_v30 }
 0x19d   :  { %1192 = vmatpush3.bf16.xpose.msra.mxu1 %v600_v31  ;;  %1193 = vmatprep.mubr.msk.bf16.mxu1 %vm1372_vm0, %v1371_v0 }
 0x19e   :  { %1203 = vmatprep.subr.bf16.mxu1 %v1371_v0 }
 0x1a4   :  { %1194 = vmatmul.mubr.msk.bf16.vlgmr.msra.gmra.mrb[16].mxu1 %vm121_vm2, %v591_v18 }
 0x1a5   :  { %1204 = vmatpush3.bf16.xpose.msra.mxu1 %v714_v33  ;;  %1205 = vmatprep.mubr.msk.bf16.mxu1 %vm1372_vm0, %v1371_v0 }
 0x1a6   :  { %1215 = vmatprep.subr.bf16.mxu1 %v1371_v0 }
 0x1ac   :  { %1206 = vmatmul.mubr.msk.bf16.vlgmr.msra.gmra.mrb[20].mxu1 %vm121_vm2, %v707_v35 }
 0x1ad   :  { %1216 = vmatpush3.bf16.xpose.msra.mxu1 %v834_v36  ;;  %1217 = vmatprep.mubr.msk.bf16.mxu1 %vm1372_vm0, %v1371_v0 }
 0x1ae   :  { %1227 = vmatprep.subr.bf16.mxu1 %v1371_v0 }
 0x1b4   :  { %1218 = vmatmul.mubr.msk.bf16.vlgmr.msra.gmra.mrb[24].mxu1 %vm121_vm2, %v827_v38 }
 0x1b5   :  { %1228 = vmatpush3.bf16.xpose.msra.mxu1 %v947_v39  ;;  %1229 = vmatprep.mubr.msk.bf16.mxu1 %vm1372_vm0, %v1371_v0 }
 0x1bc   :  { %1230 = vmatmul.mubr.msk.bf16.vlgmr.msra.gmra.mrb[28].mxu1 %vm121_vm2, %v940_v40 }
 0x257   :  { %v162_v41 = vpop.f32.mrb[0].mxu1 }
 0x258   :  { %v1147_v42 = vpop.f32.mrb[1].mxu1  ;;  %v168_v43 = vsel %vm121_vm2, %v162_v41, -inf }
 0x259   :  { %v165_v44 = vpop.f32.mrb[2].mxu1  ;;  %169 = vmax.xlane.f32.xlu0 %v168_v43 }
 0x25a   :  { %v1148_v45 = vpop.f32.mrb[3].mxu1 }
 0x25f   :  { %v277_v46 = vpop.f32.mrb[4].mxu1 }
 0x260   :  { %v1159_v47 = vpop.f32.mrb[5].mxu1  ;;  %v283_v48 = vsel %vm121_vm2, %v277_v46, -inf }
 0x261   :  { %v280_v49 = vpop.f32.mrb[6].mxu1  ;;  %284 = vmax.xlane.f32.xlu1 %v283_v48 }
 0x262   :  { %v1160_v50 = vpop.f32.mrb[7].mxu1 }
 0x267   :  { %v397_v51 = vpop.f32.mrb[8].mxu1 }
 0x268   :  { %v1171_v52 = vpop.f32.mrb[9].mxu1  ;;  %v403_v53 = vsel %vm121_vm2, %v397_v51, -inf }
 0x269   :  { %v400_v54 = vpop.f32.mrb[10].mxu1  ;;  %404 = vmax.xlane.f32.xlu0 %v403_v53 }
 0x26a   :  { %v1172_v55 = vpop.f32.mrb[11].mxu1 }
 0x26f   :  { %v1499_v56 = vpop.f32.mrb[12].mxu1 }
 0x270   :  { %v1183_v57 = vpop.f32.mrb[13].mxu1  ;;  %v516_v58 = vsel %vm121_vm2, %v1499_v56, -inf }
 0x271   :  { %v513_v59 = vpop.f32.mrb[14].mxu1  ;;  %517 = vmax.xlane.f32.xlu0 %v516_v58 }
 0x272   :  { %v1184_v60 = vpop.f32.mrb[15].mxu1 }
 0x277   :  { %v1503_v61 = vpop.f32.mrb[16].mxu1 }
 0x278   :  { %v1195_v62 = vpop.f32.mrb[17].mxu1  ;;  %v642_v63 = vsel %vm121_vm2, %v1503_v61, -inf }
 0x279   :  { %643 = vmax.xlane.f32.xlu1 %v642_v63  ;;  %v639_v1 = vpop.f32.mrb[18].mxu1 }
 0x27a   :  { %v1196_v2 = vpop.f32.mrb[19].mxu1 }
 0x27f   :  { %v1507_v3 = vpop.f32.mrb[20].mxu1 }
 0x280   :  { %v1207_v4 = vpop.f32.mrb[21].mxu1  ;;  %v756_v5 = vsel %vm121_vm2, %v1507_v3, -inf }
 0x281   :  { %757 = vmax.xlane.f32.xlu0 %v756_v5  ;;  %v753_v6 = vpop.f32.mrb[22].mxu1 }
 0x282   :  { %v1208_v7 = vpop.f32.mrb[23].mxu1 }
 0x287   :  { %v870_v8 = vpop.f32.mrb[24].mxu1 }
 0x288   :  { %v1219_v9 = vpop.f32.mrb[25].mxu1  ;;  %v876_v10 = vsel %vm121_vm2, %v870_v8, -inf }
 0x289   :  { %877 = vmax.xlane.f32.xlu1 %v876_v10  ;;  %v873_v11 = vpop.f32.mrb[26].mxu1 }
 0x28a   :  { %v1220_v13 = vpop.f32.mrb[27].mxu1 }
 0x28f   :  { %v1512_v14 = vpop.f32.mrb[28].mxu1 }
 0x290   :  { %v1231_v15 = vpop.f32.mrb[29].mxu1  ;;  %v989_v19 = vsel %vm121_vm2, %v1512_v14, -inf }
 0x291   :  { %v986_v16 = vpop.f32.mrb[30].mxu1 }
 0x292   :  { %v1232_v18 = vpop.f32.mrb[31].mxu1 }
 0x297   :  { %298 = vrot.lane.b32.xlu0 %v1447_v12, %s1380_s19 }
 0x29a   :  { %183 = vrot.lane.b32.xlu1 %v1447_v12, %s1369_s0 }
 0x2b6   :  { %990 = vmax.xlane.f32.xlu0 %v989_v19 }
 0x2e6   :  { %v170_v20 = vpop.xlane.xlu0 %169 }
 0x2e7   :  { %v171_v21 = vsub.f32 %v162_v41, %v170_v20 }
 0x2e9   :  { %v172_v22 = vpack.c.bf16 %v171_v21, %v171_v21 }
 0x2eb   :  { %v174_v23 = vmul.bf16 1069105081, %v172_v22 }
 0x2ed   :  { %1261 = vpow.bf16 %v174_v23 }
 0x2ee   :  { %v285_v24 = vpop.xlane.xlu1 %284 }
 0x2ef   :  { %v286_v25 = vsub.f32 %v277_v46, %v285_v24 }
 0x2f1   :  { %v287_v26 = vpack.c.bf16 %v286_v25, %v286_v25 }
 0x2f3   :  { %v289_v27 = vmul.bf16 1069105081, %v287_v26 }
 0x2f5   :  { %1263 = vpow.bf16 %v289_v27 }
 0x2f6   :  { %v405_v28 = vpop.xlane.xlu0 %404 }
 0x2f7   :  { %v406_v29 = vsub.f32 %v397_v51, %v405_v28 }
 0x2f8   :  { %v1520_v30 = vpop.eup %1261 }
 0x2f9   :  { %v407_v31 = vpack.c.bf16 %v406_v29, %v406_v29  ;;  %v176_v32 = vunpack.c.l.bf16 %v1520_v30 }
 0x2fb   :  { %v409_v33 = vmul.bf16 1069105081, %v407_v31  ;;  %v177_v34 = vsel %vm121_vm2, %v176_v32, 0.0 }
 0x2fc   :  { %178 = vadd.xlane.f32.xlu1 %v177_v34 }
 0x2fd   :  { %1265 = vpow.bf16 %v409_v33 }
 0x2fe   :  { %v518_v43 = vpop.xlane.xlu0 %517 }
 0x2ff   :  { %v519_v44 = vsub.f32 %v1499_v56, %v518_v43 }
 0x300   :  { %v1526_v35 = vpop.eup %1263 }
 0x301   :  { %v291_v36 = vunpack.c.l.bf16 %v1526_v35  ;;  %v520_v47 = vpack.c.bf16 %v519_v44, %v519_v44 }
 0x303   :  { %v292_v37 = vsel %vm121_vm2, %v291_v36, 0.0  ;;  %v522_v51 = vmul.bf16 1069105081, %v520_v47 }
 0x304   :  { %293 = vadd.xlane.f32.xlu0 %v292_v37 }
 0x305   :  { %1267 = vpow.bf16 %v522_v51 }
 0x306   :  { %v644_v41 = vpop.xlane.xlu1 %643 }
 0x307   :  { %v645_v48 = vsub.f32 %v1503_v61, %v644_v41 }
 0x308   :  { %v1532_v38 = vpop.eup %1265 }
 0x309   :  { %v411_v39 = vunpack.c.l.bf16 %v1532_v38  ;;  %v646_v52 = vpack.c.bf16 %v645_v48, %v645_v48 }
 0x30b   :  { %v412_v40 = vsel %vm121_vm2, %v411_v39, 0.0  ;;  %v648_v55 = vmul.bf16 1069105081, %v646_v52 }
 0x30c   :  { %413 = vadd.xlane.f32.xlu1 %v412_v40 }
 0x30d   :  { %1269 = vpow.bf16 %v648_v55 }
 0x30e   :  { %v758_v49 = vpop.xlane.xlu0 %757 }
 0x30f   :  { %v759_v50 = vsub.f32 %v1507_v3, %v758_v49 }
 0x311   :  { %v760_v54 = vpack.c.bf16 %v759_v50, %v759_v50 }
 0x312   :  { %v299_v5 = vpop.permute.xlu0 %298 }
 0x313   :  { %v762_v57 = vmul.bf16 1069105081, %v760_v54  ;;  %v304_v22 = vsel %vm188_vm3, %v299_v5, 0 }
 0x315   :  { %1271 = vpow.bf16 %v762_v57 }
 0x316   :  { %v878_v42 = vpop.xlane.xlu1 %877 }
 0x317   :  { %v879_v53 = vsub.f32 %v870_v8, %v878_v42 }
 0x319   :  { %v880_v56 = vpack.c.bf16 %v879_v53, %v879_v53 }
 0x31a   :  { %v184_v45 = vpop.permute.xlu1 %183  ;;  %418 = vrot.lane.b32.xlu0 %v1447_v12, %s1381_s20 }
 0x31b   :  { %v190_v46 = vsel %vm188_vm3, %v184_v45, 0  ;;  %v882_v58 = vmul.bf16 1069105081, %v880_v56 }
 0x31c   :  { %1150 = vmatpush3.bf16.msra.mxu0 %v190_v46 }
 0x31d   :  { %531 = vrot.lane.b32.xlu1 %v1447_v12, %s1382_s21  ;;  %1161 = vmatprep.subr.bf16.mxu0 %v1371_v0  ;;  %1273 = vpow.bf16 %v882_v58  ;;  %v1547_v12 = vpop.eup %1267 }
 0x31e   :  { %v524_v59 = vunpack.c.l.bf16 %v1547_v12  ;;  %v1550_v60 = vpop.eup %1269 }
 0x31f   :  { %v650_v63 = vunpack.c.l.bf16 %v1550_v60 }
 0x320   :  { %v1552_v61 = vpop.eup %1271  ;;  %v525_v62 = vsel %vm121_vm2, %v524_v59, 0.0 }
 0x321   :  { %v651_v2 = vsel %vm121_vm2, %v650_v63, 0.0  ;;  %v764_v3 = vunpack.c.l.bf16 %v1552_v61 }
 0x323   :  { %v765_v6 = vsel %vm121_vm2, %v764_v3, 0.0 }
 0x328   :  { %v1558_v1 = vpop.eup %1273 }
 0x329   :  { %v884_v4 = vunpack.c.l.bf16 %v1558_v1 }
 0x32b   :  { %v885_v7 = vsel %vm121_vm2, %v884_v4, 0.0 }
 0x339   :  { %526 = vadd.xlane.f32.xlu0 %v525_v62 }
 0x33d   :  { %652 = vadd.xlane.f32.xlu0 %v651_v2 }
 0x341   :  { %766 = vadd.xlane.f32.xlu1 %v765_v6  ;;  %886 = vadd.xlane.f32.xlu0 %v885_v7 }
 0x343   :  { %v991_v8 = vpop.xlane.xlu0 %990 }
 0x344   :  { %v992_v9 = vsub.f32 %v1512_v14, %v991_v8 }
 0x346   :  { %v993_v10 = vpack.c.bf16 %v992_v9, %v992_v9 }
 0x348   :  { %v995_v11 = vmul.bf16 1069105081, %v993_v10 }
 0x34a   :  { %1275 = vpow.bf16 %v995_v11 }
 0x352   :  { %771 = vrot.lane.b32.xlu1 %v1453_v17, %s1380_s19 }
 0x355   :  { %v1574_v13 = vpop.eup %1275 }
 0x356   :  { %891 = vrot.lane.b32.xlu1 %v1453_v17, %s1381_s20  ;;  %v997_v15 = vunpack.c.l.bf16 %v1574_v13 }
 0x358   :  { %v998_v16 = vsel %vm121_vm2, %v997_v15, 0.0 }
 0x359   :  { %999 = vadd.xlane.f32.xlu0 %v998_v16 }
 0x35a   :  { %1004 = vrot.lane.b32.xlu1 %v1453_v17, %s1382_s21 }
 0x36f   :  { %657 = vrot.lane.b32.xlu0 %v1453_v17, %s1369_s0 }
 0x389   :  { %v179_v14 = vpop.xlane.xlu1 %178 }
 0x38a   :  { %1277 = vrcp.f32 %v179_v14 }
 0x391   :  { %v294_v18 = vpop.xlane.xlu0 %293 }
 0x392   :  { %1279 = vrcp.f32 %v294_v18 }
 0x394   :  { %v1278_v19 = vpop.eup %1277 }
 0x395   :  { %v181_v20 = vmul.f32 %v1278_v19, %v176_v32  ;;  %v419_v25 = vpop.permute.xlu0 %418 }
 0x396   :  { %v424_v27 = vsel %vm188_vm3, %v419_v25, 0 }
 0x397   :  { %v182_v21 = vpack.c.bf16 %v181_v20, %v181_v20 }
 0x399   :  { %1152 = vmatmul.mubr.msk.bf16.vlgmr.msra.gmra.mrb[4].mxu0 %vm121_vm2, %v182_v21  ;;  %v414_v23 = vpop.xlane.xlu1 %413 }
 0x39a   :  { %1162 = vmatpush3.bf16.msra.mxu0 %v304_v22  ;;  %1281 = vrcp.f32 %v414_v23  ;;  %1163 = vmatprep.mubr.msk.bf16.mxu0 %vm1372_vm0, %v1371_v0 }
 0x39b   :  { %1173 = vmatprep.subr.bf16.mxu0 %v1371_v0 }
 0x39c   :  { %v1280_v17 = vpop.eup %1279 }
 0x39d   :  { %v296_v24 = vmul.f32 %v1280_v17, %v291_v36  ;;  %v532_v30 = vpop.permute.xlu1 %531 }
 0x39e   :  { %v537_v32 = vsel %vm188_vm3, %v532_v30, 0 }
 0x39f   :  { %v297_v26 = vpack.c.bf16 %v296_v24, %v296_v24 }
 0x3a1   :  { %1164 = vmatmul.mubr.msk.bf16.vlgmr.msra.gmra.mrb[8].mxu0 %vm121_vm2, %v297_v26 }
 0x3a2   :  { %1174 = vmatpush3.bf16.msra.mxu0 %v424_v27  ;;  %1175 = vmatprep.mubr.msk.bf16.mxu0 %vm1372_vm0, %v1371_v0 }
 0x3a3   :  { %1185 = vmatprep.subr.bf16.mxu0 %v1371_v0 }
 0x3a4   :  { %v1282_v28 = vpop.eup %1281 }
 0x3a5   :  { %v416_v29 = vmul.f32 %v1282_v28, %v411_v39 }
 0x3a7   :  { %v417_v31 = vpack.c.bf16 %v416_v29, %v416_v29 }
 0x3a9   :  { %1176 = vmatmul.mubr.msk.bf16.vlgmr.msra.gmra.mrb[12].mxu0 %vm121_vm2, %v417_v31 }
 0x3aa   :  { %1186 = vmatpush3.bf16.msra.mxu0 %v537_v32  ;;  %1187 = vmatprep.mubr.msk.bf16.mxu0 %vm1372_vm0, %v1371_v0 }
 0x3ab   :  { %1197 = vmatprep.subr.bf16.mxu0 %v1371_v0 }
 0x3c6   :  { %v527_v33 = vpop.xlane.xlu0 %526 }
 0x3c7   :  { %1283 = vrcp.f32 %v527_v33 }
 0x3ca   :  { %v653_v37 = vpop.xlane.xlu0 %652 }
 0x3cb   :  { %1285 = vrcp.f32 %v653_v37 }
 0x3ce   :  { %v767_v38 = vpop.xlane.xlu1 %766  ;;  %v887_v39 = vpop.xlane.xlu0 %886 }
 0x3cf   :  { %1287 = vrcp.f32 %v767_v38 }
 0x3d0   :  { %1289 = vrcp.f32 %v887_v39 }
 0x3d1   :  { %v1284_v34 = vpop.eup %1283 }
 0x3d2   :  { %v529_v35 = vmul.f32 %v1284_v34, %v524_v59  ;;  %v772_v45 = vpop.permute.xlu1 %771 }
 0x3d3   :  { %v777_v48 = vsel %vm188_vm3, %v772_v45, 0 }
 0x3d4   :  { %v530_v36 = vpack.c.bf16 %v529_v35, %v529_v35 }
 0x3d5   :  { %v1286_v40 = vpop.eup %1285 }
 0x3d6   :  { %1188 = vmatmul.mubr.msk.bf16.vlgmr.msra.gmra.mrb[16].mxu0 %vm121_vm2, %v530_v36  ;;  %v655_v42 = vmul.f32 %v1286_v40, %v650_v63  ;;  %v892_v50 = vpop.permute.xlu1 %891 }
 0x3d7   :  { %1199 = vmatprep.mubr.msk.bf16.mxu0 %vm1372_vm0, %v1371_v0  ;;  %v897_v53 = vsel %vm188_vm3, %v892_v50, 0 }
 0x3d8   :  { %v656_v46 = vpack.c.bf16 %v655_v42, %v655_v42 }
 0x3d9   :  { %v1288_v47 = vpop.eup %1287 }
 0x3da   :  { %v769_v49 = vmul.f32 %v1288_v47, %v764_v3  ;;  %v1290_v52 = vpop.eup %1289  ;;  %v1005_v55 = vpop.permute.xlu1 %1004 }
 0x3db   :  { %v889_v54 = vmul.f32 %v1290_v52, %v884_v4  ;;  %v1010_v58 = vsel %vm188_vm3, %v1005_v55, 0 }
 0x3dc   :  { %v770_v51 = vpack.c.bf16 %v769_v49, %v769_v49 }
 0x3dd   :  { %v890_v56 = vpack.c.bf16 %v889_v54, %v889_v54 }
 0x3e6   :  { %v1000_v41 = vpop.xlane.xlu0 %999 }
 0x3e7   :  { %1291 = vrcp.f32 %v1000_v41 }
 0x3ea   :  { %v658_v43 = vpop.permute.xlu0 %657 }
 0x3eb   :  { %v663_v44 = vsel %vm188_vm3, %v658_v43, 0 }
 0x3ec   :  { %1198 = vmatpush3.bf16.msra.mxu0 %v663_v44 }
 0x3ed   :  { %1209 = vmatprep.subr.bf16.mxu0 %v1371_v0 }
 0x3ef   :  { %1200 = vmatmul.mubr.msk.bf16.vlgmr.msra.gmra.mrb[20].mxu0 %vm121_vm2, %v656_v46 }
 0x3f0   :  { %1210 = vmatpush3.bf16.msra.mxu0 %v777_v48  ;;  %1211 = vmatprep.mubr.msk.bf16.mxu0 %vm1372_vm0, %v1371_v0 }
 0x3f1   :  { %1221 = vmatprep.subr.bf16.mxu0 %v1371_v0  ;;  %v1292_v57 = vpop.eup %1291 }
 0x3f2   :  { %v1002_v12 = vmul.f32 %v1292_v57, %v997_v15 }
 0x3f4   :  { %v1003_v59 = vpack.c.bf16 %v1002_v12, %v1002_v12 }
 0x3f7   :  { %1212 = vmatmul.mubr.msk.bf16.vlgmr.msra.gmra.mrb[24].mxu0 %vm121_vm2, %v770_v51 }
 0x3f8   :  { %1222 = vmatpush3.bf16.msra.mxu0 %v897_v53  ;;  %1223 = vmatprep.mubr.msk.bf16.mxu0 %vm1372_vm0, %v1371_v0 }
 0x3f9   :  { %1233 = vmatprep.subr.bf16.mxu0 %v1371_v0 }
 0x3ff   :  { %1224 = vmatmul.mubr.msk.bf16.vlgmr.msra.gmra.mrb[28].mxu0 %vm121_vm2, %v890_v56 }
 0x400   :  { %1234 = vmatpush3.bf16.msra.mxu0 %v1010_v58  ;;  %1235 = vmatprep.mubr.msk.bf16.mxu0 %vm1372_vm0, %v1371_v0 }
 0x407   :  { %1236 = vmatmul.mubr.msk.bf16.vlgmr.msra.gmra.mrb[32].mxu0 %vm121_vm2, %v1003_v59 }
 0x46c   :  { %v226_v60 = vpop.f32.mrb[4].mxu0 }
 0x46d   :  { %v1153_v61 = vpop.f32.mrb[5].mxu0 }
 0x46e   :  { %v229_v62 = vpop.f32.mrb[6].mxu0 }
 0x46f   :  { %v1154_v63 = vpop.f32.mrb[7].mxu0 }
 0x474   :  { %v340_v1 = vpop.f32.mrb[8].mxu0 }
 0x475   :  { %347 = vrot.lane.b32.xlu0 %v340_v1, %s1367_s23  ;;  %v1165_v2 = vpop.f32.mrb[9].mxu0 }
 0x476   :  { %v343_v3 = vpop.f32.mrb[10].mxu0 }
 0x477   :  { %v1166_v4 = vpop.f32.mrb[11].mxu0 }
 0x47c   :  { %v460_v5 = vpop.f32.mrb[12].mxu0 }
 0x47d   :  { %v1177_v6 = vpop.f32.mrb[13].mxu0 }
 0x47e   :  { %v463_v7 = vpop.f32.mrb[14].mxu0 }
 0x47f   :  { %v1178_v0 = vpop.f32.mrb[15].mxu0 }
 0x4a9   :  { %v573_v8 = vpop.f32.mrb[16].mxu0 }
 0x4aa   :  { %580 = vrot.lane.b32.xlu1 %v573_v8, %s1367_s23  ;;  %v1189_v9 = vpop.f32.mrb[17].mxu0 }
 0x4ab   :  { %v576_v10 = vpop.f32.mrb[18].mxu0 }
 0x4ac   :  { %v1190_v11 = vpop.f32.mrb[19].mxu0 }
 0x4c2   :  { %v699_v13 = vpop.f32.mrb[20].mxu0 }
 0x4c3   :  { %v1201_v15 = vpop.f32.mrb[21].mxu0 }
 0x4c4   :  { %v702_v16 = vpop.f32.mrb[22].mxu0 }
 0x4c5   :  { %v1202_v14 = vpop.f32.mrb[23].mxu0 }
 0x4ca   :  { %v813_v18 = vpop.f32.mrb[24].mxu0 }
 0x4cb   :  { %820 = vrot.lane.b32.xlu0 %v813_v18, %s1367_s23  ;;  %v1213_v19 = vpop.f32.mrb[25].mxu0 }
 0x4cc   :  { %v816_v20 = vpop.f32.mrb[26].mxu0 }
 0x4cd   :  { %v1214_v21 = vpop.f32.mrb[27].mxu0 }
 0x4d2   :  { %v933_v22 = vpop.f32.mrb[28].mxu0 }
 0x4d3   :  { %v1225_v23 = vpop.f32.mrb[29].mxu0 }
 0x4d4   :  { %v936_v17 = vpop.f32.mrb[30].mxu0 }
 0x4d5   :  { %v1226_v24 = vpop.f32.mrb[31].mxu0 }
 0x4da   :  { %v1046_v25 = vpop.f32.mrb[32].mxu0 }
 0x4db   :  { %1053 = vrot.lane.b32.xlu1 %v1046_v25, %s1367_s23  ;;  %v1237_v26 = vpop.f32.mrb[33].mxu0 }
 0x4dc   :  { %v1049_v27 = vpop.f32.mrb[34].mxu0 }
 0x4dd   :  { %v1238_v28 = vpop.f32.mrb[35].mxu0 }
 0x4e7   :  { %v348_v29 = vpop.permute.xlu0 %347 }
 0x4e8   :  { %v350_v30 = vsel %vm121_vm2, %v226_v60, %v348_v29 }
 0x4e9   :  { %352 = vst.msk [vmem:[#allocation7] sm:$0xff] %vm351_vm4, %v350_v30 }
 0x51c   :  { %v581_v31 = vpop.permute.xlu1 %580 }
 0x51d   :  { %v583_v32 = vsel %vm121_vm2, %v460_v5, %v581_v31 }
 0x51e   :  { %585 = vrot.lane.b32.xlu1 %v583_v32, %s1383_s24 }
 0x53d   :  { %v821_v33 = vpop.permute.xlu0 %820 }
 0x53e   :  { %v823_v34 = vsel %vm121_vm2, %v699_v13, %v821_v33 }
 0x53f   :  { %825 = vst.msk [vmem:[#allocation7 + $0x8] sm:$0xff] %vm351_vm4, %v823_v34 }
 0x54d   :  { %v1054_v35 = vpop.permute.xlu1 %1053 }
 0x54e   :  { %v1056_v36 = vsel %vm121_vm2, %v933_v22, %v1054_v35 }
 0x54f   :  { %1058 = vrot.lane.b32.xlu1 %v1056_v36, %s1383_s24 }
 0x590   :  { %v586_v37 = vpop.permute.xlu1 %585 }
 0x591   :  { %589 = vst.msk [vmem:[#allocation7] sm:$0xff] %vm588_vm5, %v586_v37 }
 0x5c1   :  { %v1059_v38 = vpop.permute.xlu1 %1058 }
 0x5c2   :  { %1061 = vst.msk [vmem:[#allocation7 + $0x8] sm:$0xff] %vm588_vm5, %v1059_v38 }
 0x5c3   :  { %1348 = shalt.err (!%p1345_p6)
}
 0x5c4   :  { %s1349_s30 = scalar_lea.hbm %s1663_s3, 256 }
 0x5c5   :  { %p1350_p7 = scmp.ne.s32.totalorder %s1663_s3, %s1349_s30  ;;  %p1353_p8 = scmp.lt.u32.totalorder %s1349_s30, %s1663_s3 }
 0x5c7   :  { %p1355_p9 = pnand %p1353_p8, %p1350_p7 }
 0x5c9   :  { %1358 = shalt.err (!%p1355_p9)
}
 0x5ca   :  { %1073 = dma.vmem_to_hbm [thread:$0]  %s1068_s26, 256, %s1663_s3, [#allocation4], %s1366_s22, %s1366_s22, %s1367_s23  }
 0x5cb   :  { %1363 = dma.done.wait [#allocation4], 256  }
 0x5cc   :  { %1364 = vsyncadd [#allocation4], 4294967040 }
 0x5cd   :  { %1077 = vsyncpa [#allocation3], 1 }
 0x5ce   :  { %1078 = vsyncpa [#allocation6], 1 }
 0x5cf   :  { %1079 = vsyncpa [#allocation4], 1 }

</bundles_post_ra>
